<compile_context>
chip_gen: v7x
topology: tpu7x:2x2x1
jax: 0.10.0
libtpu: 0.0.40
codegen_flags: <defaults>
</compile_context>

<pallas_src>
import functools

import jax
import jax.numpy as jnp
from jax import lax
from jax.experimental import pallas as pl
from jax.experimental.pallas import tpu as pltpu

EPS = 1e-5                      # torch BatchNorm2d default eps
VMEM_LIMIT = 32 * 1024 * 1024   # leave headroom on v7x's 64 MiB VMEM
ACT_DTYPE = jnp.bfloat16        # on-HBM activation storage dtype


def _round_up(x, m):
    return ((x + m - 1) // m) * m


def _pick_m_tile(M, cap=512):
    """Largest power-of-two tile <= cap that divides M (avoids pad/slice copies)."""
    for t in (2048, 1024, 512, 256, 128, 64, 32, 16, 8):
        if t <= cap and t <= M and M % t == 0:
            return t, M
    TM = min(cap, _round_up(M, 8))
    return TM, _round_up(M, TM)


def _pick_k_tile(K, cap=1536):
    """K tile that divides K; multiples of 128 when K is 128-aligned."""
    if K <= cap or K % 128 != 0:
        return K
    for t in range(cap, 127, -128):
        if K % t == 0:
            return t
    return 128


# ----------------------- fused conv GEMM + BN statistics ---------------------

def _conv_gemm_kernel(a_ref, b_ref, y_ref, sum_ref, sq_ref, acc_ref):
    """One (TM, TK) x (TK, C) step of y = A @ B with a BN-statistics epilogue."""
    @pl.when(pl.program_id(1) == 0)
    def _():
        acc_ref[...] = jnp.zeros_like(acc_ref)

    # bf16 operands, f32 accumulation on the MXU.
    acc_ref[...] += jnp.dot(a_ref[...], b_ref[...],
                            preferred_element_type=jnp.float32)

    @pl.when(pl.program_id(1) == pl.num_programs(1) - 1)
    def _():
        y = acc_ref[...]
        # per-M-tile partial statistics in f32 (finalized in tiny (C,)-sized JAX math)
        sum_ref[0] = jnp.sum(y, axis=0, keepdims=True)
        sq_ref[0] = jnp.sum(y * y, axis=0, keepdims=True)
        y_ref[...] = y.astype(y_ref.dtype)


def pallas_conv_gemm(a, b):
    """a: (M, K) bf16, b: (K, C) bf16 -> (y bf16 (M, C), per-tile sum, per-tile sumsq)."""
    M, K = a.shape
    _, C = b.shape
    TM, Mp = _pick_m_tile(M, cap=512)
    if Mp != M:
        a = jnp.pad(a, ((0, Mp - M), (0, 0)))   # zero rows -> zero y rows -> stats unaffected
    TK = _pick_k_tile(K)
    nm, nk = Mp // TM, K // TK

    y, ssum, ssq = pl.pallas_call(
        _conv_gemm_kernel,
        out_shape=[jax.ShapeDtypeStruct((Mp, C), ACT_DTYPE),
                   jax.ShapeDtypeStruct((nm, 1, C), jnp.float32),
                   jax.ShapeDtypeStruct((nm, 1, C), jnp.float32)],
        grid_spec=pltpu.PrefetchScalarGridSpec(
            num_scalar_prefetch=0,
            grid=(nm, nk),
            in_specs=[pl.BlockSpec((TM, TK), lambda i, k: (i, k)),
                      pl.BlockSpec((TK, C), lambda i, k: (k, 0))],
            out_specs=[pl.BlockSpec((TM, C), lambda i, k: (i, 0)),
                       pl.BlockSpec((1, 1, C), lambda i, k: (i, 0, 0)),
                       pl.BlockSpec((1, 1, C), lambda i, k: (i, 0, 0))],
            scratch_shapes=[pltpu.VMEM((TM, C), jnp.float32)]),
        compiler_params=pltpu.CompilerParams(
            dimension_semantics=("parallel", "arbitrary"),
            vmem_limit_bytes=VMEM_LIMIT),
    )(a, b)
    if Mp != M:
        y = y[:M]
    return y, ssum, ssq


# ------------------- elementwise BN apply (+residual) (+ReLU) ----------------

def _bn_apply_kernel(y_ref, s_ref, t_ref, o_ref, *, relu):
    out = y_ref[...] * s_ref[...] + t_ref[...]          # bf16 * f32 -> f32 math
    if relu:
        out = jnp.maximum(out, 0.0)
    o_ref[...] = out.astype(o_ref.dtype)


def _bn_apply_res_kernel(y_ref, s_ref, t_ref, r_ref, o_ref, *, relu):
    out = y_ref[...] * s_ref[...] + t_ref[...] + r_ref[...]
    if relu:
        out = jnp.maximum(out, 0.0)
    o_ref[...] = out.astype(o_ref.dtype)


def pallas_bn_apply(y, scale, shift, residual=None, relu=True):
    """out = y * scale + shift [+ residual] [relu], tiled over M. Math in f32, I/O bf16."""
    M, C = y.shape
    if C < 128 and 128 % C == 0 and M % (128 // C) == 0:
        # lane-dense view for narrow-channel layers: (M, C) -> (M*C/128, 128)
        f = 128 // C
        Md, Cd = M // f, 128
        y = y.reshape(Md, Cd)
        residual = None if residual is None else residual.reshape(Md, Cd)
        scale = jnp.tile(scale, f)
        shift = jnp.tile(shift, f)
    else:
        Md, Cd = M, C

    TM, Mp = _pick_m_tile(Md, cap=1024)
    if Mp != Md:
        y = jnp.pad(y, ((0, Mp - Md), (0, 0)))
        if residual is not None:
            residual = jnp.pad(residual, ((0, Mp - Md), (0, 0)))

    row = pl.BlockSpec((TM, Cd), lambda i: (i, 0))
    par = pl.BlockSpec((1, Cd), lambda i: (0, 0))
    if residual is None:
        kernel = functools.partial(_bn_apply_kernel, relu=relu)
        in_specs = [row, par, par]
        args = (y, scale.reshape(1, Cd), shift.reshape(1, Cd))
    else:
        kernel = functools.partial(_bn_apply_res_kernel, relu=relu)
        in_specs = [row, par, par, row]
        args = (y, scale.reshape(1, Cd), shift.reshape(1, Cd), residual)

    out = pl.pallas_call(
        kernel,
        out_shape=jax.ShapeDtypeStruct((Mp, Cd), ACT_DTYPE),
        grid_spec=pltpu.PrefetchScalarGridSpec(
            num_scalar_prefetch=0, grid=(Mp // TM,),
            in_specs=in_specs,
            out_specs=row),
        compiler_params=pltpu.CompilerParams(
            dimension_semantics=("parallel",),
            vmem_limit_bytes=VMEM_LIMIT),
    )(*args)
    if Mp != Md:
        out = out[:Md]
    return out.reshape(M, C)


# ------------------------ fused head: avgpool + linears ----------------------

def _head_kernel(x_ref, w_ref, b_ref, o_ref):
    feat = jnp.mean(x_ref[...].astype(jnp.float32), axis=1)      # adaptive avg pool, f32
    o_ref[...] = jnp.dot(feat.astype(jnp.bfloat16), w_ref[...],
                         preferred_element_type=jnp.float32) + b_ref[...]


def pallas_head(x, w, b):
    """x: (N, HW, C) bf16, w: (C, F), b: (F,) -> (N, F) f32. Avg-pool + linear fused."""
    N, HW, C = x.shape
    F = w.shape[1]
    return pl.pallas_call(
        _head_kernel,
        out_shape=jax.ShapeDtypeStruct((N, F), jnp.float32),
        grid_spec=pltpu.PrefetchScalarGridSpec(
            num_scalar_prefetch=0, grid=(1,),
            in_specs=[pl.BlockSpec((N, HW, C), lambda i: (0, 0, 0)),
                      pl.BlockSpec((C, F), lambda i: (0, 0)),
                      pl.BlockSpec((1, F), lambda i: (0, 0))],
            out_specs=pl.BlockSpec((N, F), lambda i: (0, 0))),
        compiler_params=pltpu.CompilerParams(vmem_limit_bytes=VMEM_LIMIT),
    )(x, w.astype(jnp.bfloat16), b.reshape(1, F))


# ------------------------------- glue (JAX) ----------------------------------

def _im2col(x, kh, kw, stride, padding):
    """x is expected in bf16 (activation storage dtype); patches are built in bf16."""
    x = x.astype(ACT_DTYPE)
    N, H, W, C = x.shape
    OH = (H + 2 * padding - kh) // stride + 1
    OW = (W + 2 * padding - kw) // stride + 1
    xp = jnp.pad(x, ((0, 0), (padding, padding), (padding, padding), (0, 0)))
    cols = []
    for dy in range(kh):
        for dx in range(kw):
            cols.append(xp[:, dy:dy + stride * (OH - 1) + 1:stride,
                           dx:dx + stride * (OW - 1) + 1:stride, :])
    patches = jnp.stack(cols, axis=3)                       # (N, OH, OW, kh*kw, C)
    return patches.reshape(N * OH * OW, kh * kw * C), (N, OH, OW)


def conv_bn_act(x, w, gamma, beta, *, stride, padding, relu=True, residual=None):
    """conv(bias=False) -> BN(batch stats) [-> +residual] [-> ReLU].  x NHWC bf16, w HWIO f32."""
    kh, kw, cin, cout = w.shape
    patches, (N, OH, OW) = _im2col(x, kh, kw, stride, padding)
    M = N * OH * OW
    K = kh * kw * cin
    wmat = w.reshape(K, cout).astype(jnp.bfloat16)
    Kp = _round_up(K, 128)
    if Kp != K and (Kp - K) * 4 <= K:        # align K to 128 lanes only when cheap (<=25%)
        patches = jnp.pad(patches, ((0, 0), (0, Kp - K)))
        wmat = jnp.pad(wmat, ((0, Kp - K), (0, 0)))

    y, ssum, ssq = pallas_conv_gemm(patches, wmat)

    # finalize train-mode batch statistics (biased var, like torch BN normalization)
    mean = jnp.sum(ssum, axis=(0, 1)) / M
    var = jnp.maximum(jnp.sum(ssq, axis=(0, 1)) / M - mean * mean, 0.0)
    scale = gamma * lax.rsqrt(var + EPS)
    shift = beta - mean * scale

    res = None if residual is None else residual.reshape(M, cout)
    out = pallas_bn_apply(y, scale, shift, residual=res, relu=relu)
    return out.reshape(N, OH, OW, cout)


def maxpool_3x3_s2_p1(x):
    """3x3/s2/p1 max pool as a fused 9-way maximum tree (plain JAX/XLA; avoids
    materializing a (9, M, C) stack in HBM)."""
    N, H, W, C = x.shape
    OH = (H + 2 - 3) // 2 + 1
    OW = (W + 2 - 3) // 2 + 1
    xp = jnp.pad(x, ((0, 0), (1, 1), (1, 1), (0, 0)), constant_values=-jnp.inf)
    out = None
    for dy in range(3):
        for dx in range(3):
            v = xp[:, dy:dy + 2 * (OH - 1) + 1:2, dx:dx + 2 * (OW - 1) + 1:2, :]
            out = v if out is None else jnp.maximum(out, v)
    return out


def basic_block(x, blk):
    identity = x
    out = conv_bn_act(x, blk['conv1_w'], *blk['bn1'],
                      stride=blk['stride'], padding=1, relu=True)
    if 'down_w' in blk:
        identity = conv_bn_act(x, blk['down_w'], *blk['down_bn'],
                               stride=blk['stride'], padding=0, relu=False)
    out = conv_bn_act(out, blk['conv2_w'], *blk['bn2'],
                      stride=1, padding=1, relu=True, residual=identity)
    return out


def resnet_encoder_forward(params, x_nchw):
    """Matches ResNetEncoder.forward: returns
       (target_mean, log_target_std, sensitive_mean, log_sensitive_std)."""
    x = jnp.transpose(x_nchw, (0, 2, 3, 1)).astype(ACT_DTYPE)         # NCHW -> NHWC, bf16
    x = conv_bn_act(x, params['conv1_w'], *params['bn1'],
                    stride=2, padding=3, relu=True)
    x = maxpool_3x3_s2_p1(x)
    for name in ('layer1', 'layer2', 'layer3', 'layer4'):
        for blk in params[name]:
            x = basic_block(x, blk)

    N, H, W, C = x.shape
    z = params['z_dim']
    wt, bt = params['fc_target']
    ws, bs = params['fc_sens']
    # Fused head: avg-pool + both latent linear layers in one pallas_call.
    # TODO(synk): torch detaches x for the sensitive head; that only changes gradients,
    #             forward values are identical, so both heads share one fused GEMM here.
    w_all = jnp.concatenate([wt, ws], axis=1)          # (512, 4*z)
    b_all = jnp.concatenate([bt, bs], axis=0)          # (4*z,)
    out = pallas_head(x.reshape(N, H * W, C), w_all, b_all)
    out_target, out_sens = out[:, :2 * z], out[:, 2 * z:]
    return (out_target[:, :z], out_target[:, z:],
            out_sens[:, :z], out_sens[:, z:])


# ------------------------- deterministic param init --------------------------

def init_params(key, z_dim=2):
    keys = iter(jax.random.split(key, 64))

    def conv_w(kh, kw, cin, cout):
        std = (2.0 / (kh * kw * cin)) ** 0.5
        return std * jax.random.normal(next(keys), (kh, kw, cin, cout), jnp.float32)

    def bn(c):  # gamma=1, beta=0 (torch BatchNorm2d default init)
        return jnp.ones((c,), jnp.float32), jnp.zeros((c,), jnp.float32)

    def linear(cin, cout):
        lim = 1.0 / (cin ** 0.5)
        w = jax.random.uniform(next(keys), (cin, cout), jnp.float32, -lim, lim)
        b = jax.random.uniform(next(keys), (cout,), jnp.float32, -lim, lim)
        return w, b

    params = {'conv1_w': conv_w(7, 7, 3, 64), 'bn1': bn(64), 'z_dim': z_dim}
    cfg = [('layer1', 64, 64, 1), ('layer2', 64, 128, 2),
           ('layer3', 128, 256, 2), ('layer4', 256, 512, 2)]
    for name, cin, cout, stride in cfg:
        blocks = []
        for b in range(2):
            s = stride if b == 0 else 1
            bcin = cin if b == 0 else cout
            blk = {'stride': s,
                   'conv1_w': conv_w(3, 3, bcin, cout), 'bn1': bn(cout),
                   'conv2_w': conv_w(3, 3, cout, cout), 'bn2': bn(cout)}
            if s != 1 or bcin != cout:
                blk['down_w'] = conv_w(1, 1, bcin, cout)
                blk['down_bn'] = bn(cout)
            blocks.append(blk)
        params[name] = blocks
    params['fc_target'] = linear(512, 2 * z_dim)   # LinearToLatentRepresentation
    params['fc_sens'] = linear(512, 2 * z_dim)
    return params


# ----------------------------------- main ------------------------------------

if __name__ == "__main__":
    key = jax.random.PRNGKey(0)
    k_param, k_x = jax.random.split(key)
    params = init_params(k_param, z_dim=2)

    # small but resnet18-compatible input: N=2, 3 channels, 64x64 spatial (NCHW)
    X = jax.random.normal(k_x, (2, 3, 64, 64), jnp.float32)

    t_mean, t_logstd, s_mean, s_logstd = resnet_encoder_forward(params, X)
    for out in (t_mean, t_logstd, s_mean, s_logstd):
        jax.block_until_ready(out)

    assert t_mean.shape == (2, 2) and t_logstd.shape == (2, 2)
    assert s_mean.shape == (2, 2) and s_logstd.shape == (2, 2)
    print("KERNEL_OK")
</pallas_src>

<mosaic_0001>
module attributes {stable_mosaic.version = 11 : i64} {
  func.func @_conv_gemm_kernel(%arg0: i32, %arg1: i32, %arg2: memref<512x147xbf16, #tpu.memory_space<vmem>>, %arg3: memref<147x64xbf16, #tpu.memory_space<vmem>>, %arg4: memref<512x64xbf16, #tpu.memory_space<vmem>>, %arg5: memref<1x1x64xf32, #tpu.memory_space<vmem>>, %arg6: memref<1x1x64xf32, #tpu.memory_space<vmem>>, %arg7: memref<512x64xf32, #tpu.memory_space<vmem>>) attributes {dimension_semantics = [#tpu.dimension_semantics<parallel>, #tpu.dimension_semantics<arbitrary>], iteration_bounds = array<i64: 4, 1>, scalar_prefetch = 0 : i64, scratch_operands = 1 : i64, tpu.core_type = #tpu.core_type<tc>, window_params = [{transform_indices = @transform_0, window_bounds = array<i64: 512, 147>}, {transform_indices = @transform_1, window_bounds = array<i64: 147, 64>}, {transform_indices = @transform_2, window_bounds = array<i64: 512, 64>}, {transform_indices = @transform_3, window_bounds = array<i64: 1, 1, 64>}, {transform_indices = @transform_4, window_bounds = array<i64: 1, 1, 64>}]} {
    %c0_i32 = arith.constant 0 : i32
    %0 = arith.cmpi eq, %arg1, %c0_i32 : i32
    %1 = arith.extui %0 : i1 to i32
    %c0_i32_0 = arith.constant 0 : i32
    %2 = arith.cmpi ne, %1, %c0_i32_0 : i32
    scf.if %2 {
      %cst_10 = arith.constant 0.000000e+00 : f32
      %12 = vector.broadcast %cst_10 : f32 to vector<512x64xf32>
      %c0_11 = arith.constant 0 : index
      %c0_12 = arith.constant 0 : index
      %13 = vector.load %arg7[%c0_11, %c0_12] : memref<512x64xf32, #tpu.memory_space<vmem>>, vector<512x64xf32>
      tpu.vector_store %arg7[%c0_11, %c0_12], %12 {strides = array<i32>} : memref<512x64xf32, #tpu.memory_space<vmem>>, vector<512x64xf32>,
    } else {
    }
    %c0 = arith.constant 0 : index
    %c0_1 = arith.constant 0 : index
    %3 = vector.load %arg7[%c0, %c0_1] : memref<512x64xf32, #tpu.memory_space<vmem>>, vector<512x64xf32>
    %c0_2 = arith.constant 0 : index
    %c0_3 = arith.constant 0 : index
    %4 = vector.load %arg2[%c0_2, %c0_3] : memref<512x147xbf16, #tpu.memory_space<vmem>>, vector<512x147xbf16>
    %c0_4 = arith.constant 0 : index
    %c0_5 = arith.constant 0 : index
    %5 = vector.load %arg3[%c0_4, %c0_5] : memref<147x64xbf16, #tpu.memory_space<vmem>>, vector<147x64xbf16>
    %cst = arith.constant dense<0.000000e+00> : vector<512x64xf32>
    %6 = tpu.matmul %4, %5, %cst {dimension_numbers = #tpu.dot_dimension_numbers<[1], [0], [0], [1], [0, 0, 1, 1], [], []>} : vector<512x147xbf16>, vector<147x64xbf16>, vector<512x64xf32> -> vector<512x64xf32>
    %7 = arith.addf %3, %6 : vector<512x64xf32>
    %c0_6 = arith.constant 0 : index
    %c0_7 = arith.constant 0 : index
    %8 = vector.load %arg7[%c0_6, %c0_7] : memref<512x64xf32, #tpu.memory_space<vmem>>, vector<512x64xf32>
    tpu.vector_store %arg7[%c0_6, %c0_7], %7 {strides = array<i32>} : memref<512x64xf32, #tpu.memory_space<vmem>>, vector<512x64xf32>,
    %c0_i32_8 = arith.constant 0 : i32
    %9 = arith.cmpi eq, %arg1, %c0_i32_8 : i32
    %10 = arith.extui %9 : i1 to i32
    %c0_i32_9 = arith.constant 0 : i32
    %11 = arith.cmpi ne, %10, %c0_i32_9 : i32
    scf.if %11 {
      %c0_10 = arith.constant 0 : index
      %c0_11 = arith.constant 0 : index
      %12 = vector.load %arg7[%c0_10, %c0_11] : memref<512x64xf32, #tpu.memory_space<vmem>>, vector<512x64xf32>
      %cst_12 = arith.constant dense<0.000000e+00> : vector<64xf32>
      %13 = vector.multi_reduction <add>, %12, %cst_12 [0] : vector<512x64xf32> to vector<64xf32>
      %14 = vector.shape_cast %13 : vector<64xf32> to vector<1x64xf32>
      %c0_13 = arith.constant 0 : index
      %c0_14 = arith.constant 0 : index
      %c0_15 = arith.constant 0 : index
      %15 = vector.load %arg5[%c0_13, %c0_14, %c0_15] : memref<1x1x64xf32, #tpu.memory_space<vmem>>, vector<1x1x64xf32>
      %16 = vector.shape_cast %15 : vector<1x1x64xf32> to vector<1x64xf32>
      %17 = vector.shape_cast %14 : vector<1x64xf32> to vector<1x1x64xf32>
      tpu.vector_store %arg5[%c0_13, %c0_14, %c0_15], %17 {strides = array<i32>} : memref<1x1x64xf32, #tpu.memory_space<vmem>>, vector<1x1x64xf32>,
      %18 = arith.mulf %12, %12 : vector<512x64xf32>
      %cst_16 = arith.constant dense<0.000000e+00> : vector<64xf32>
      %19 = vector.multi_reduction <add>, %18, %cst_16 [0] : vector<512x64xf32> to vector<64xf32>
      %20 = vector.shape_cast %19 : vector<64xf32> to vector<1x64xf32>
      %c0_17 = arith.constant 0 : index
      %c0_18 = arith.constant 0 : index
      %c0_19 = arith.constant 0 : index
      %21 = vector.load %arg6[%c0_17, %c0_18, %c0_19] : memref<1x1x64xf32, #tpu.memory_space<vmem>>, vector<1x1x64xf32>
      %22 = vector.shape_cast %21 : vector<1x1x64xf32> to vector<1x64xf32>
      %23 = vector.shape_cast %20 : vector<1x64xf32> to vector<1x1x64xf32>
      tpu.vector_store %arg6[%c0_17, %c0_18, %c0_19], %23 {strides = array<i32>} : memref<1x1x64xf32, #tpu.memory_space<vmem>>, vector<1x1x64xf32>,
      %24 = arith.truncf %12 : vector<512x64xf32> to vector<512x64xbf16>
      %c0_20 = arith.constant 0 : index
      %c0_21 = arith.constant 0 : index
      %25 = vector.load %arg4[%c0_20, %c0_21] : memref<512x64xbf16, #tpu.memory_space<vmem>>, vector<512x64xbf16>
      tpu.vector_store %arg4[%c0_20, %c0_21], %24 {strides = array<i32>} : memref<512x64xbf16, #tpu.memory_space<vmem>>, vector<512x64xbf16>,
    } else {
    }
    return
  }
  func.func @transform_0(%arg0: i32, %arg1: i32) -> (i32, i32) {
    %c0_i32 = arith.constant 0 : i32
    return %arg0, %arg1 : i32, i32
  }
  func.func @transform_1(%arg0: i32, %arg1: i32) -> (i32, i32) {
    %c0_i32 = arith.constant 0 : i32
    %c0_i32_0 = arith.constant 0 : i32
    return %arg1, %c0_i32 : i32, i32
  }
  func.func @transform_2(%arg0: i32, %arg1: i32) -> (i32, i32) {
    %c0_i32 = arith.constant 0 : i32
    %c0_i32_0 = arith.constant 0 : i32
    return %arg0, %c0_i32 : i32, i32
  }
  func.func @transform_3(%arg0: i32, %arg1: i32) -> (i32, i32, i32) {
    %c0_i32 = arith.constant 0 : i32
    %c0_i32_0 = arith.constant 0 : i32
    %c0_i32_1 = arith.constant 0 : i32
    return %arg0, %c0_i32, %c0_i32_0 : i32, i32, i32
  }
  func.func @transform_4(%arg0: i32, %arg1: i32) -> (i32, i32, i32) {
    %c0_i32 = arith.constant 0 : i32
    %c0_i32_0 = arith.constant 0 : i32
    %c0_i32_1 = arith.constant 0 : i32
    return %arg0, %c0_i32, %c0_i32_0 : i32, i32, i32
  }
}

</mosaic_0001>

<bundles_post_ra>
// kernel: tpu_custom_call.1
= control target key start
LH: loop header
LB: loop body
LE: loop exit
PB: predicated region body
PF: predicated region fallthrough
CT: control target
= control target key end

     0   :  { %10 = vsyncpa [#allocation4], 0  ;;  %s3899_s0 = inlined_call_operand.vmem [shape: bf16[2048,147], index: 0, kind: input, shape index: {}]   ;;  %s3900_s1 = inlined_call_operand.vmem [shape: bf16[147,64], index: 1, kind: input, shape index: {}]   ;;  %s3901_s2 = inlined_call_operand.vmem [shape: bf16[2048,64], index: 2, kind: output, shape index: {0}]   ;;  %s3902_s3 = inlined_call_operand.hbm [shape: f32[4,1,64], index: 3, kind: output, shape index: {1}]   ;;  %s3903_s4 = inlined_call_operand.hbm [shape: f32[4,1,64], index: 4, kind: output, shape index: {2}]  }
   0x1   :  { %12 = vsyncpa [#allocation4 + $0x1], 0 }
   0x2   :  { %13 = vsyncpa [#allocation6], 0 }
   0x3   :  { %15 = vsyncpa [#allocation6 + $0x1], 0  ;;  %s2845_s15 = smov 0   ;;  %s2847_s16 = smov 0  }
   0x4   :  { %s2849_s17 = smov 0   ;;  %s2851_s18 = smov 0  }
   0x5   :  { %s2853_s19 = smov 0   ;;  %s2855_s20 = smov 0  }
   0x6 LB: > { %s2254_s21 = sadd.s32 4294967295, %s2813_s20   ;;  %s2255_s22 = sadd.s32 4294967294, %s2813_s20   ;;  %s2813_s20 = sphi %s2855_s20, %s21_s20   ;;  %s2809_s19 = sphi %s2853_s19, %s3910_s19   ;;  %s2805_s18 = sphi %s2851_s18, %s3909_s18   ;;  %s2801_s17 = sphi %s2849_s17, %s3908_s17   ;;  %s2797_s16 = sphi %s2847_s16, %s3907_s16   ;;  %s2793_s15 = sphi %s2845_s15, %s3906_s15  }
   0x7   : > { %s33_s23 = sadd.s32 1, %s2809_s19  ;;  %s120_s24 = sadd.s32 1, %s2801_s17 }
   0x8   : > { %p35_p0 = scmp.ge.s32.totalorder %s33_s23, 4  ;;  %p130_p1 = scmp.ne.s32.totalorder %s2801_s17, %s2797_s16 }
   0x9   : > { %p131_p2 = scmp.eq.s32.totalorder %s2254_s21, 3  ;;  %p136_p3 = scmp.ne.s32.totalorder %s2797_s16, %s2793_s15 }
   0xa   : > { %s3912_s23 = smov (%p35_p0, %s33_s23), 0  ;;  %p137_p5 = scmp.eq.s32.totalorder %s2255_s22, 3 }
   0xb   : > { %p2885_p4 = por %p131_p2, %p130_p1  ;;  %s117_s26 = ssub.s32 %s2809_s19, %s3912_s23 }
   0xc   : > { %p2259_p6 = scmp.ge.s32.totalorder %s2813_s20, 1  ;;  %p118_p7 = scmp.eq.s32.totalorder %s117_s26, 0 }
   0xd   : > { %p2892_p8 = por %p137_p5, %p136_p3  ;;  %p205_p9 = scmp.lt.s32.totalorder %s2813_s20, 5 }
   0xe   : > { %s2898_s28 = scalar_select %p118_p7, %s2801_s17, %s120_s24  }
   0xf   : > { %p206_p10 = pnand %p2259_p6, %p205_p9 }
  0x10   : > { %v2587_v0 = vld [vmem:[%s3900_s1] sm:$0xff] (!%p206_p10)   ;;  %v2815_v1 = vmov (!%p206_p10), 0   ;;  %v2588_v2 = vld [vmem:[%s3900_s1 + $0x8] sm:$0xff] (!%p206_p10)   ;;  %v2589_v3 = vld [vmem:[%s3900_s1 + $0x10] sm:$0xff] (!%p206_p10)   ;;  %s2260_s9 = sshll.u32 (!%p206_p10), %s2805_s18, 6  ;;  %vm835_vm0 = vcmask (!%p206_p10), 154624  }
  0x11   : > { %209 = sbr.rel (%p206_p10) target bundleno = 518 (0x206), region = 28  ;;  %939 = vmatprep.subr.bf16.mxu0 (!%p206_p10), %v2815_v1  ;;  %2504 = vmatprep.subr.bf16.mxu1 (!%p206_p10), %v2815_v1  ;;  %p251_p11 = scmp.lt.s32.totalorder (!%p206_p10), %s2260_s9, 255  ;;  %v2590_v4 = vld [vmem:[%s3900_s1 + $0x18] sm:$0xff] (!%p206_p10)   ;;  %v2591_v5 = vld [vmem:[%s3900_s1 + $0x20] sm:$0xff] (!%p206_p10)   ;;  %v2592_v7 = vld [vmem:[%s3900_s1 + $0x28] sm:$0xff] (!%p206_p10)   ;;  %vm932_vm1 = vcmask (!%p206_p10), 1040384  }
  0x12   : > { %940 = vmatpush1.bf16.msra.mxu0 (!%p206_p10), %v2587_v0  ;;  %2514 = vmatpush1.bf16.msra.mxu1 (!%p206_p10), %v2587_v0  ;;  %v2593_v8 = vld [vmem:[%s3900_s1 + $0x30] sm:$0xff] (!%p206_p10)   ;;  %v2594_v10 = vld [vmem:[%s3900_s1 + $0x38] sm:$0xff] (!%p206_p10)   ;;  %vm933_vm2 = vcmask (!%p206_p10), 1041408   ;;  %v2816_v11 = vmov (!%p206_p10), 65535   ;;  %v2595_v13 = vld [vmem:[%s3900_s1 + $0x40] sm:$0xff] (!%p206_p10)   ;;  %vm278_vm3 = vcmask (!%p206_p10), 523264  }
  0x13   : > { %941 = vmatprep.subr.bf16.mxu0 (!%p206_p10), %v2815_v1  ;;  %2505 = vmatprep.subr.bf16.mxu1 (!%p206_p10), %v2815_v1  ;;  %v934_v12 = vsel (!%p206_p10), %vm932_vm1, 4294967295, %v2816_v11  ;;  %v2596_v14 = vld [vmem:[%s3900_s1 + $0x48] ss:$0 sps:$4 sm:$0x33] (!%p206_p10)   ;;  %v2817_v17 = vmov (!%p206_p10), 0.0   ;;  %vm2013_vm4 = vcmask (!%p206_p10), 519168  }
  0x14   : > { %v935_v15 = vsel (!%p206_p10), %vm933_vm2, %v934_v12, 0  ;;  %279 = vst.msk [vmem:[#allocation2] sm:$0xff] (!%p206_p10), %vm278_vm3, %v2817_v17  ;;  %280 = vst.msk [vmem:[#allocation2 + $0x8] sm:$0xff] (!%p206_p10), %vm278_vm3, %v2817_v17  ;;  %s2435_s24 = sshll.u32 (!%p206_p10), %s2805_s18, 4  ;;  %vm1557_vm5 = vcmask (!%p206_p10), 516096   ;;  %s2818_s14 = smov (!%p206_p10), [#allocation3]  }
  0x15   : > { %v2961_v16 = vand.u32 (!%p206_p10), %v2596_v14, %v935_v15  ;;  %281 = vst.msk [vmem:[#allocation2 + $0x10] sm:$0xff] (!%p206_p10), %vm278_vm3, %v2817_v17  ;;  %282 = vst.msk [vmem:[#allocation2 + $0x18] sm:$0xff] (!%p206_p10), %vm278_vm3, %v2817_v17  ;;  %s3818_s8 = scalar_lea.hbm (!%p206_p10), %s3902_s3, %s2435_s24  ;;  %s3826_s11 = scalar_lea.hbm (!%p206_p10), %s3903_s4, %s2435_s24 }
  0x16   : > { %942 = vmatpush1.bf16.msra.mxu0 (!%p206_p10), %v2588_v2  ;;  %2515 = vmatpush1.bf16.msra.mxu1 (!%p206_p10), %v2588_v2  ;;  %283 = vst.msk [vmem:[#allocation2 + $0x20] sm:$0xff] (!%p206_p10), %vm278_vm3, %v2817_v17  ;;  %284 = vst.msk [vmem:[#allocation2 + $0x28] sm:$0xff] (!%p206_p10), %vm278_vm3, %v2817_v17 }
  0x17   : > { %943 = vmatprep.subr.bf16.mxu0 (!%p206_p10), %v2815_v1  ;;  %2506 = vmatprep.subr.bf16.mxu1 (!%p206_p10), %v2815_v1  ;;  %285 = vst.msk [vmem:[#allocation2 + $0x30] sm:$0xff] (!%p206_p10), %vm278_vm3, %v2817_v17  ;;  %286 = vst.msk [vmem:[#allocation2 + $0x38] sm:$0xff] (!%p206_p10), %vm278_vm3, %v2817_v17 }
  0x18   : > { %s3914_s9 = smov (!%p251_p11, %s2260_s9), 255  ;;  %287 = vst.msk [vmem:[#allocation2 + $0x40] sm:$0xff] %vm278_vm3, %v2817_v17  ;;  %288 = vst.msk [vmem:[#allocation2 + $0x48] sm:$0xff] %vm278_vm3, %v2817_v17 }
  0x19   : > { %s2439_s12 = sshll.u32 %s3914_s9, 3  ;;  %289 = vst.msk [vmem:[#allocation2 + $0x50] sm:$0xff] %vm278_vm3, %v2817_v17  ;;  %290 = vst.msk [vmem:[#allocation2 + $0x58] sm:$0xff] %vm278_vm3, %v2817_v17  ;;  %s2264_s13 = sshll.u32 %s3914_s9, 2 }
  0x1a   : > { %944 = vmatpush1.bf16.msra.mxu0 %v2589_v3  ;;  %2516 = vmatpush1.bf16.msra.mxu1 %v2589_v3  ;;  %s2927_s21 = scalar_lea.vmem %s3899_s0, %s2439_s12  ;;  %291 = vst.msk [vmem:[#allocation2 + $0x60] sm:$0xff] %vm278_vm3, %v2817_v17  ;;  %292 = vst.msk [vmem:[#allocation2 + $0x68] sm:$0xff] %vm278_vm3, %v2817_v17  ;;  %s3195_s22 = scalar_lea.vmem %s3901_s2, %s2264_s13 }
  0x1b   : > { %945 = vmatprep.subr.bf16.mxu0 %v2815_v1  ;;  %2507 = vmatprep.subr.bf16.mxu1 %v2815_v1  ;;  %v2599_v6 = vld [vmem:[%s2927_s21 + $0x4] ss:$8 sps:$4 sm:$0xff]   ;;  %293 = vst.msk [vmem:[#allocation2 + $0x70] sm:$0xff] %vm278_vm3, %v2817_v17  ;;  %294 = vst.msk [vmem:[#allocation2 + $0x78] sm:$0xff] %vm278_vm3, %v2817_v17  ;;  %v2597_v18 = vld [vmem:[%s2927_s21] ss:$8 sps:$4 sm:$0xff]  }
  0x1c   : > { %2339 = vmatprep.mubr.msk.bf16.mxu0 %vm835_vm0, %v2599_v6  ;;  %v2623_v9 = vld [vmem:[%s2927_s21 + $0x104] ss:$8 sps:$4 sm:$0xff]   ;;  %295 = vst.msk [vmem:[#allocation2 + $0x80] sm:$0xff] %vm278_vm3, %v2817_v17  ;;  %296 = vst.msk [vmem:[#allocation2 + $0x88] sm:$0xff] %vm278_vm3, %v2817_v17  ;;  %v2600_v19 = vld [vmem:[%s2927_s21 + $0x14] ss:$8 sps:$4 sm:$0xff]  }
  0x1d   : > { %2355 = vmatprep.mubr.msk.bf16.mxu1 %vm835_vm0, %v2623_v9  ;;  %297 = vst.msk [vmem:[#allocation2 + $0x90] sm:$0xff] %vm278_vm3, %v2817_v17  ;;  %298 = vst.msk [vmem:[#allocation2 + $0x98] sm:$0xff] %vm278_vm3, %v2817_v17  ;;  %v2621_v20 = vld [vmem:[%s2927_s21 + $0x100] ss:$8 sps:$4 sm:$0xff]   ;;  %v2627_v21 = vld [vmem:[%s2927_s21 + $0x114] ss:$8 sps:$4 sm:$0xff]  }
  0x1e   : > { %946 = vmatpush1.bf16.msra.mxu0 %v2590_v4  ;;  %2517 = vmatpush1.bf16.msra.mxu1 %v2590_v4  ;;  %299 = vst.msk [vmem:[#allocation2 + $0xa0] sm:$0xff] %vm278_vm3, %v2817_v17  ;;  %300 = vst.msk [vmem:[#allocation2 + $0xa8] sm:$0xff] %vm278_vm3, %v2817_v17  ;;  %v2602_v22 = vld [vmem:[%s2927_s21 + $0x10] ss:$8 sps:$4 sm:$0xff]   ;;  %v2603_v23 = vld [vmem:[%s2927_s21 + $0x24] ss:$8 sps:$4 sm:$0xff]  }
  0x1f   : > { %947 = vmatprep.subr.bf16.mxu0 %v2815_v1  ;;  %2508 = vmatprep.subr.bf16.mxu1 %v2815_v1  ;;  %301 = vst.msk [vmem:[#allocation2 + $0xb0] sm:$0xff] %vm278_vm3, %v2817_v17  ;;  %302 = vst.msk [vmem:[#allocation2 + $0xb8] sm:$0xff] %vm278_vm3, %v2817_v17  ;;  %v2629_v24 = vld [vmem:[%s2927_s21 + $0x110] ss:$8 sps:$4 sm:$0xff]   ;;  %v2633_v25 = vld [vmem:[%s2927_s21 + $0x124] ss:$8 sps:$4 sm:$0xff]  }
  0x20   : > { %303 = vst.msk [vmem:[#allocation2 + $0xc0] sm:$0xff] %vm278_vm3, %v2817_v17  ;;  %304 = vst.msk [vmem:[#allocation2 + $0xc8] sm:$0xff] %vm278_vm3, %v2817_v17  ;;  %v2605_v26 = vld [vmem:[%s2927_s21 + $0x20] ss:$8 sps:$4 sm:$0xff]   ;;  %v2606_v27 = vld [vmem:[%s2927_s21 + $0x34] ss:$8 sps:$4 sm:$0xff]  }
  0x21   : > { %305 = vst.msk [vmem:[#allocation2 + $0xd0] sm:$0xff] %vm278_vm3, %v2817_v17  ;;  %306 = vst.msk [vmem:[#allocation2 + $0xd8] sm:$0xff] %vm278_vm3, %v2817_v17  ;;  %v2635_v28 = vld [vmem:[%s2927_s21 + $0x120] ss:$8 sps:$4 sm:$0xff]   ;;  %v2639_v29 = vld [vmem:[%s2927_s21 + $0x134] ss:$8 sps:$4 sm:$0xff]  }
  0x22   : > { %948 = vmatpush1.bf16.msra.mxu0 %v2591_v5  ;;  %2518 = vmatpush1.bf16.msra.mxu1 %v2591_v5  ;;  %307 = vst.msk [vmem:[#allocation2 + $0xe0] sm:$0xff] %vm278_vm3, %v2817_v17  ;;  %308 = vst.msk [vmem:[#allocation2 + $0xe8] sm:$0xff] %vm278_vm3, %v2817_v17  ;;  %v2608_v30 = vld [vmem:[%s2927_s21 + $0x30] ss:$8 sps:$4 sm:$0xff]   ;;  %v2609_v32 = vld [vmem:[%s2927_s21 + $0x44] ss:$8 sps:$4 sm:$0xff]  }
  0x23   : > { %949 = vmatprep.subr.bf16.mxu0 %v2815_v1  ;;  %2509 = vmatprep.subr.bf16.mxu1 %v2815_v1  ;;  %309 = vst.msk [vmem:[#allocation2 + $0xf0] sm:$0xff] %vm278_vm3, %v2817_v17  ;;  %310 = vst.msk [vmem:[#allocation2 + $0xf8] sm:$0xff] %vm278_vm3, %v2817_v17  ;;  %v2641_v31 = vld [vmem:[%s2927_s21 + $0x130] ss:$8 sps:$4 sm:$0xff]   ;;  %v2645_v33 = vld [vmem:[%s2927_s21 + $0x144] ss:$8 sps:$4 sm:$0xff]  }
  0x24   : > { %311 = vst.msk [vmem:[#allocation2 + $0x100] sm:$0xff] %vm278_vm3, %v2817_v17  ;;  %312 = vst.msk [vmem:[#allocation2 + $0x108] sm:$0xff] %vm278_vm3, %v2817_v17  ;;  %v2611_v34 = vld [vmem:[%s2927_s21 + $0x40] ss:$8 sps:$4 sm:$0xff]   ;;  %v2612_v36 = vld [vmem:[%s2927_s21 + $0x54] ss:$8 sps:$4 sm:$0xff]  }
  0x25   : > { %313 = vst.msk [vmem:[#allocation2 + $0x110] sm:$0xff] %vm278_vm3, %v2817_v17  ;;  %314 = vst.msk [vmem:[#allocation2 + $0x118] sm:$0xff] %vm278_vm3, %v2817_v17  ;;  %v2647_v35 = vld [vmem:[%s2927_s21 + $0x140] ss:$8 sps:$4 sm:$0xff]   ;;  %v2651_v37 = vld [vmem:[%s2927_s21 + $0x154] ss:$8 sps:$4 sm:$0xff]  }
  0x26   : > { %950 = vmatpush1.bf16.msra.mxu0 %v2592_v7  ;;  %2519 = vmatpush1.bf16.msra.mxu1 %v2592_v7  ;;  %315 = vst.msk [vmem:[#allocation2 + $0x120] sm:$0xff] %vm278_vm3, %v2817_v17  ;;  %316 = vst.msk [vmem:[#allocation2 + $0x128] sm:$0xff] %vm278_vm3, %v2817_v17  ;;  %v2614_v38 = vld [vmem:[%s2927_s21 + $0x50] ss:$8 sps:$4 sm:$0xff]   ;;  %v2615_v40 = vld [vmem:[%s2927_s21 + $0x64] ss:$8 sps:$4 sm:$0xff]  }
  0x27   : > { %951 = vmatprep.subr.bf16.mxu0 %v2815_v1  ;;  %2510 = vmatprep.subr.bf16.mxu1 %v2815_v1  ;;  %317 = vst.msk [vmem:[#allocation2 + $0x130] sm:$0xff] %vm278_vm3, %v2817_v17  ;;  %318 = vst.msk [vmem:[#allocation2 + $0x138] sm:$0xff] %vm278_vm3, %v2817_v17  ;;  %v2653_v39 = vld [vmem:[%s2927_s21 + $0x150] ss:$8 sps:$4 sm:$0xff]   ;;  %v2657_v41 = vld [vmem:[%s2927_s21 + $0x164] ss:$8 sps:$4 sm:$0xff]  }
  0x28   : > { %319 = vst.msk [vmem:[#allocation2 + $0x140] sm:$0xff] %vm278_vm3, %v2817_v17  ;;  %320 = vst.msk [vmem:[#allocation2 + $0x148] sm:$0xff] %vm278_vm3, %v2817_v17  ;;  %v2617_v42 = vld [vmem:[%s2927_s21 + $0x60] ss:$8 sps:$4 sm:$0xff]   ;;  %v2618_v44 = vld [vmem:[%s2927_s21 + $0x74] ss:$8 sps:$4 sm:$0xff]  }
  0x29   : > { %321 = vst.msk [vmem:[#allocation2 + $0x150] sm:$0xff] %vm278_vm3, %v2817_v17  ;;  %322 = vst.msk [vmem:[#allocation2 + $0x158] sm:$0xff] %vm278_vm3, %v2817_v17  ;;  %v2659_v43 = vld [vmem:[%s2927_s21 + $0x160] ss:$8 sps:$4 sm:$0xff]   ;;  %v2663_v45 = vld [vmem:[%s2927_s21 + $0x174] ss:$8 sps:$4 sm:$0xff]  }
  0x2a   : > { %952 = vmatpush1.bf16.msra.mxu0 %v2593_v8  ;;  %2520 = vmatpush1.bf16.msra.mxu1 %v2593_v8  ;;  %323 = vst.msk [vmem:[#allocation2 + $0x160] sm:$0xff] %vm278_vm3, %v2817_v17  ;;  %324 = vst.msk [vmem:[#allocation2 + $0x168] sm:$0xff] %vm278_vm3, %v2817_v17  ;;  %v2620_v46 = vld [vmem:[%s2927_s21 + $0x70] ss:$8 sps:$4 sm:$0xff]   ;;  %v2624_v48 = vld [vmem:[%s2927_s21 + $0x84] ss:$8 sps:$4 sm:$0xff]  }
  0x2b   : > { %953 = vmatprep.subr.bf16.mxu0 %v2815_v1  ;;  %2511 = vmatprep.subr.bf16.mxu1 %v2815_v1  ;;  %325 = vst.msk [vmem:[#allocation2 + $0x170] sm:$0xff] %vm278_vm3, %v2817_v17  ;;  %326 = vst.msk [vmem:[#allocation2 + $0x178] sm:$0xff] %vm278_vm3, %v2817_v17  ;;  %v2665_v47 = vld [vmem:[%s2927_s21 + $0x170] ss:$8 sps:$4 sm:$0xff]   ;;  %v2669_v49 = vld [vmem:[%s2927_s21 + $0x184] ss:$8 sps:$4 sm:$0xff]  }
  0x2c   : > { %327 = vst.msk [vmem:[#allocation2 + $0x180] sm:$0xff] %vm278_vm3, %v2817_v17  ;;  %328 = vst.msk [vmem:[#allocation2 + $0x188] sm:$0xff] %vm278_vm3, %v2817_v17  ;;  %v2626_v50 = vld [vmem:[%s2927_s21 + $0x80] ss:$8 sps:$4 sm:$0xff]   ;;  %v2630_v52 = vld [vmem:[%s2927_s21 + $0x94] ss:$8 sps:$4 sm:$0xff]  }
  0x2d   : > { %329 = vst.msk [vmem:[#allocation2 + $0x190] sm:$0xff] %vm278_vm3, %v2817_v17  ;;  %330 = vst.msk [vmem:[#allocation2 + $0x198] sm:$0xff] %vm278_vm3, %v2817_v17  ;;  %v2671_v51 = vld [vmem:[%s2927_s21 + $0x180] ss:$8 sps:$4 sm:$0xff]   ;;  %v2672_v53 = vld [vmem:[%s2927_s21 + $0x194] ss:$8 sps:$4 sm:$0xff]  }
  0x2e   : > { %954 = vmatpush1.bf16.msra.mxu0 %v2594_v10  ;;  %2521 = vmatpush1.bf16.msra.mxu1 %v2594_v10  ;;  %331 = vst.msk [vmem:[#allocation2 + $0x1a0] sm:$0xff] %vm278_vm3, %v2817_v17  ;;  %332 = vst.msk [vmem:[#allocation2 + $0x1a8] sm:$0xff] %vm278_vm3, %v2817_v17  ;;  %v2632_v54 = vld [vmem:[%s2927_s21 + $0x90] ss:$8 sps:$4 sm:$0xff]   ;;  %v2636_v56 = vld [vmem:[%s2927_s21 + $0xa4] ss:$8 sps:$4 sm:$0xff]  }
  0x2f   : > { %955 = vmatprep.subr.bf16.mxu0 %v2815_v1  ;;  %2512 = vmatprep.subr.bf16.mxu1 %v2815_v1  ;;  %333 = vst.msk [vmem:[#allocation2 + $0x1b0] sm:$0xff] %vm278_vm3, %v2817_v17  ;;  %334 = vst.msk [vmem:[#allocation2 + $0x1b8] sm:$0xff] %vm278_vm3, %v2817_v17  ;;  %v2674_v55 = vld [vmem:[%s2927_s21 + $0x190] ss:$8 sps:$4 sm:$0xff]   ;;  %v2675_v57 = vld [vmem:[%s2927_s21 + $0x1a4] ss:$8 sps:$4 sm:$0xff]  }
  0x30   : > { %335 = vst.msk [vmem:[#allocation2 + $0x1c0] sm:$0xff] %vm278_vm3, %v2817_v17  ;;  %336 = vst.msk [vmem:[#allocation2 + $0x1c8] sm:$0xff] %vm278_vm3, %v2817_v17  ;;  %v2638_v58 = vld [vmem:[%s2927_s21 + $0xa0] ss:$8 sps:$4 sm:$0xff]   ;;  %v2642_v60 = vld [vmem:[%s2927_s21 + $0xb4] ss:$8 sps:$4 sm:$0xff]  }
  0x31   : > { %337 = vst.msk [vmem:[#allocation2 + $0x1d0] sm:$0xff] %vm278_vm3, %v2817_v17  ;;  %338 = vst.msk [vmem:[#allocation2 + $0x1d8] sm:$0xff] %vm278_vm3, %v2817_v17  ;;  %v2677_v59 = vld [vmem:[%s2927_s21 + $0x1a0] ss:$8 sps:$4 sm:$0xff]   ;;  %v2678_v61 = vld [vmem:[%s2927_s21 + $0x1b4] ss:$8 sps:$4 sm:$0xff]  }
  0x32   : > { %956 = vmatpush1.bf16.msra.mxu0 %v2595_v13  ;;  %2522 = vmatpush1.bf16.msra.mxu1 %v2595_v13  ;;  %339 = vst.msk [vmem:[#allocation2 + $0x1e0] sm:$0xff] %vm278_vm3, %v2817_v17  ;;  %340 = vst.msk [vmem:[#allocation2 + $0x1e8] sm:$0xff] %vm278_vm3, %v2817_v17  ;;  %v2644_v62 = vld [vmem:[%s2927_s21 + $0xb0] ss:$8 sps:$4 sm:$0xff]   ;;  %v2648_v0 = vld [vmem:[%s2927_s21 + $0xc4] ss:$8 sps:$4 sm:$0xff]  }
  0x33   : > { %341 = vst.msk [vmem:[#allocation2 + $0x1f0] sm:$0xff] %vm278_vm3, %v2817_v17  ;;  %342 = vst.msk [vmem:[#allocation2 + $0x1f8] sm:$0xff] %vm278_vm3, %v2817_v17  ;;  %957 = vmatprep.subr.bf16.mxu0 %v2815_v1  ;;  %2513 = vmatprep.subr.bf16.mxu1 %v2815_v1  ;;  %v2680_v63 = vld [vmem:[%s2927_s21 + $0x1b0] ss:$8 sps:$4 sm:$0xff]   ;;  %v2681_v1 = vld [vmem:[%s2927_s21 + $0x1c4] ss:$8 sps:$4 sm:$0xff]  }
  0x34   : > { %v2650_v2 = vld [vmem:[%s2927_s21 + $0xc0] ss:$8 sps:$4 sm:$0xff]   ;;  %v2654_v4 = vld [vmem:[%s2927_s21 + $0xd4] ss:$8 sps:$4 sm:$0xff]   ;;  %v2656_v6 = vld [vmem:[%s2927_s21 + $0xd0] ss:$8 sps:$4 sm:$0xff]  }
  0x35   : > { %v2683_v3 = vld [vmem:[%s2927_s21 + $0x1c0] ss:$8 sps:$4 sm:$0xff]   ;;  %v2684_v5 = vld [vmem:[%s2927_s21 + $0x1d4] ss:$8 sps:$4 sm:$0xff]   ;;  %v2686_v7 = vld [vmem:[%s2927_s21 + $0x1d0] ss:$8 sps:$4 sm:$0xff]  }
  0x36   : > { %958 = vmatpush1.bf16.msra.mxu0 %v2961_v16  ;;  %2523 = vmatpush1.bf16.msra.mxu1 %v2961_v16  ;;  %v2660_v8 = vld [vmem:[%s2927_s21 + $0xe4] ss:$8 sps:$4 sm:$0xff]   ;;  %v2662_v10 = vld [vmem:[%s2927_s21 + $0xe0] ss:$8 sps:$4 sm:$0xff]   ;;  %v2666_v12 = vld [vmem:[%s2927_s21 + $0xf4] ss:$8 sps:$4 sm:$0xff]  }
  0x37   : > { %v2687_v9 = vld [vmem:[%s2927_s21 + $0x1e4] ss:$8 sps:$4 sm:$0xff]   ;;  %v2689_v11 = vld [vmem:[%s2927_s21 + $0x1e0] ss:$8 sps:$4 sm:$0xff]   ;;  %v2690_v13 = vld [vmem:[%s2927_s21 + $0x1f4] ss:$8 sps:$4 sm:$0xff]  }
  0x38   : > { %v2668_v14 = vld [vmem:[%s2927_s21 + $0xf0] ss:$8 sps:$4 sm:$0xff]   ;;  %v343_v16 = vld [vmem:[#allocation2] sm:$0xff]  ;;  %s3808_s9 = sand.u32 1, %s2797_s16  }
  0x39   : > { %972 = vmatmul.mubr.bf16.vlgmr.msra.gmra.mrb[0].mxu0 %v2597_v18  ;;  %1100 = vmatmul.mubr.bf16.vlgmr.msra.gmra.mrb[0].mxu1 %v2621_v20  ;;  %v2692_v15 = vld [vmem:[%s2927_s21 + $0x1f0] ss:$8 sps:$4 sm:$0xff]   ;;  %v375_v17 = vld [vmem:[#allocation2 + $0x100] sm:$0xff]  ;;  %s242_s26 = scalar_lea.vmem [#allocation3], %s3808_s9  ;;  %s248_s30 = scalar_lea.vmem [#allocation5], %s3808_s9 }
  0x3a   : > { %2340 = vmatprep.mubr.msk.bf16.mxu0 %vm835_vm0, %v2600_v19  ;;  %2356 = vmatprep.mubr.msk.bf16.mxu1 %vm835_vm0, %v2627_v21  ;;  %v344_v19 = vld [vmem:[#allocation2 + $0x8] sm:$0xff]  ;;  %s2104_s29 = sshll.u32 %s242_s26, 4  ;;  %s2117_s5 = sshll.u32 %s248_s30, 4  ;;  %s3820_s29 = int_to_ptr.vmem [resolvable:$true] %s2104_s29  ;;  %s3828_s5 = int_to_ptr.vmem [resolvable:$true] %s2117_s5 }
  0x3b   : > { %v376_v21 = vld [vmem:[#allocation2 + $0x108] sm:$0xff]  ;;  %s2084_s12 = scalar_lea.sflag [#allocation4], %s3808_s9  ;;  %s2703_s13 = scalar_lea.vmem %s3820_s29, 16 }
  0x3c   : > { %p2704_p12 = scmp.ne.s32.totalorder %s3820_s29, %s2703_s13  ;;  %s2707_s21 = sshll.u32 %s2818_s14, 4  ;;  %s2708_s21 = int_to_ptr.vmem [resolvable:$false] %s2707_s21 }
  0x3d   : > { %p2710_p1 = scmp.lt.s32.totalorder %s3820_s29, %s2708_s21 }
  0x3e   : > { %p2705_p13 = pnand %p2704_p12, %p2885_p4 }
  0x40   : > { %p2706_p0 = pneg %p2705_p13 }
  0x41   : > { %980 = vmatmul.mubr.bf16.gmra.mrb[4].mxu0 %v2602_v22  ;;  %1108 = vmatmul.mubr.bf16.gmra.mrb[4].mxu1 %v2629_v24 }
  0x42   : > { %2341 = vmatprep.mubr.msk.bf16.mxu0 %vm835_vm0, %v2603_v23  ;;  %2357 = vmatprep.mubr.msk.bf16.mxu1 %vm835_vm0, %v2633_v25 }
  0x49   : > { %988 = vmatmul.mubr.bf16.gmra.mrb[8].mxu0 %v2605_v26  ;;  %1116 = vmatmul.mubr.bf16.gmra.mrb[8].mxu1 %v2635_v28 }
  0x4a   : > { %2342 = vmatprep.mubr.msk.bf16.mxu0 %vm835_vm0, %v2606_v27  ;;  %2358 = vmatprep.mubr.msk.bf16.mxu1 %vm835_vm0, %v2639_v29 }
  0x51   : > { %996 = vmatmul.mubr.bf16.gmra.mrb[12].mxu0 %v2608_v30  ;;  %1124 = vmatmul.mubr.bf16.gmra.mrb[12].mxu1 %v2641_v31 }
  0x52   : > { %2343 = vmatprep.mubr.msk.bf16.mxu0 %vm835_vm0, %v2609_v32  ;;  %2359 = vmatprep.mubr.msk.bf16.mxu1 %vm835_vm0, %v2645_v33  ;;  %v345_v32 = vld [vmem:[#allocation2 + $0x10] sm:$0xff] }
  0x53   : > { %v377_v33 = vld [vmem:[#allocation2 + $0x110] sm:$0xff] }
  0x59   : > { %1004 = vmatmul.mubr.bf16.gmra.mrb[16].mxu0 %v2611_v34  ;;  %1132 = vmatmul.mubr.bf16.gmra.mrb[16].mxu1 %v2647_v35  ;;  %v346_v35 = vld [vmem:[#allocation2 + $0x18] sm:$0xff] }
  0x5a   : > { %2344 = vmatprep.mubr.msk.bf16.mxu0 %vm835_vm0, %v2612_v36  ;;  %2360 = vmatprep.mubr.msk.bf16.mxu1 %vm835_vm0, %v2651_v37 }
  0x61   : > { %1012 = vmatmul.mubr.bf16.gmra.mrb[20].mxu0 %v2614_v38  ;;  %1140 = vmatmul.mubr.bf16.gmra.mrb[20].mxu1 %v2653_v39 }
  0x62   : > { %2345 = vmatprep.mubr.msk.bf16.mxu0 %vm835_vm0, %v2615_v40  ;;  %2361 = vmatprep.mubr.msk.bf16.mxu1 %vm835_vm0, %v2657_v41  ;;  %v378_v41 = vld [vmem:[#allocation2 + $0x118] sm:$0xff] }
  0x69   : > { %1020 = vmatmul.mubr.bf16.gmra.mrb[24].mxu0 %v2617_v42  ;;  %1148 = vmatmul.mubr.bf16.gmra.mrb[24].mxu1 %v2659_v43 }
  0x6a   : > { %2346 = vmatprep.mubr.msk.bf16.mxu0 %vm835_vm0, %v2618_v44  ;;  %2362 = vmatprep.mubr.msk.bf16.mxu1 %vm835_vm0, %v2663_v45 }
  0x71   : > { %1028 = vmatmul.mubr.bf16.gmra.mrb[28].mxu0 %v2620_v46  ;;  %1156 = vmatmul.mubr.bf16.gmra.mrb[28].mxu1 %v2665_v47 }
  0x72   : > { %2347 = vmatprep.mubr.msk.bf16.mxu0 %vm835_vm0, %v2624_v48  ;;  %2363 = vmatprep.mubr.msk.bf16.mxu1 %vm835_vm0, %v2669_v49 }
  0x79   : > { %1036 = vmatmul.mubr.bf16.gmra.mrb[32].mxu0 %v2626_v50  ;;  %1164 = vmatmul.mubr.bf16.gmra.mrb[32].mxu1 %v2671_v51 }
  0x7a   : > { %2348 = vmatprep.mubr.msk.bf16.mxu0 %vm835_vm0, %v2630_v52  ;;  %2364 = vmatprep.mubr.msk.bf16.mxu1 %vm835_vm0, %v2672_v53 }
  0x81   : > { %1044 = vmatmul.mubr.bf16.gmra.mrb[36].mxu0 %v2632_v54  ;;  %1172 = vmatmul.mubr.bf16.gmra.mrb[36].mxu1 %v2674_v55  ;;  %v347_v55 = vld [vmem:[#allocation2 + $0x20] sm:$0xff] }
  0x82   : > { %2349 = vmatprep.mubr.msk.bf16.mxu0 %vm835_vm0, %v2636_v56  ;;  %2365 = vmatprep.mubr.msk.bf16.mxu1 %vm835_vm0, %v2675_v57  ;;  %v379_v56 = vld [vmem:[#allocation2 + $0x120] sm:$0xff] }
  0x89   : > { %1052 = vmatmul.mubr.bf16.gmra.mrb[40].mxu0 %v2638_v58  ;;  %1180 = vmatmul.mubr.bf16.gmra.mrb[40].mxu1 %v2677_v59  ;;  %v348_v59 = vld [vmem:[#allocation2 + $0x28] sm:$0xff] }
  0x8a   : > { %2350 = vmatprep.mubr.msk.bf16.mxu0 %vm835_vm0, %v2642_v60  ;;  %2366 = vmatprep.mubr.msk.bf16.mxu1 %vm835_vm0, %v2678_v61 }
  0x91   : > { %1060 = vmatmul.mubr.bf16.gmra.mrb[44].mxu0 %v2644_v62  ;;  %1188 = vmatmul.mubr.bf16.gmra.mrb[44].mxu1 %v2680_v63 }
  0x92   : > { %2351 = vmatprep.mubr.msk.bf16.mxu0 %vm835_vm0, %v2648_v0  ;;  %2367 = vmatprep.mubr.msk.bf16.mxu1 %vm835_vm0, %v2681_v1 }
  0x99   : > { %1068 = vmatmul.mubr.bf16.gmra.mrb[48].mxu0 %v2650_v2  ;;  %1196 = vmatmul.mubr.bf16.gmra.mrb[48].mxu1 %v2683_v3 }
  0x9a   : > { %2352 = vmatprep.mubr.msk.bf16.mxu0 %vm835_vm0, %v2654_v4  ;;  %2368 = vmatprep.mubr.msk.bf16.mxu1 %vm835_vm0, %v2684_v5 }
  0xa1   : > { %1076 = vmatmul.mubr.bf16.gmra.mrb[52].mxu0 %v2656_v6  ;;  %1204 = vmatmul.mubr.bf16.gmra.mrb[52].mxu1 %v2686_v7 }
  0xa2   : > { %2353 = vmatprep.mubr.msk.bf16.mxu0 %vm835_vm0, %v2660_v8  ;;  %2369 = vmatprep.mubr.msk.bf16.mxu1 %vm835_vm0, %v2687_v9 }
  0xa9   : > { %1084 = vmatmul.mubr.bf16.gmra.mrb[56].mxu0 %v2662_v10  ;;  %1212 = vmatmul.mubr.bf16.gmra.mrb[56].mxu1 %v2689_v11  ;;  %v380_v11 = vld [vmem:[#allocation2 + $0x128] sm:$0xff] }
  0xaa   : > { %2354 = vmatprep.mubr.msk.bf16.mxu0 %vm835_vm0, %v2666_v12  ;;  %2370 = vmatprep.mubr.msk.bf16.mxu1 %vm835_vm0, %v2690_v13 }
  0xb1   : > { %1092 = vmatmul.mubr.bf16.gmra.mrb[60].mxu0 %v2668_v14  ;;  %1220 = vmatmul.mubr.bf16.gmra.mrb[60].mxu1 %v2692_v15  ;;  %v349_v14 = vld [vmem:[#allocation2 + $0x30] sm:$0xff] }
  0xb2   : > { %v381_v15 = vld [vmem:[#allocation2 + $0x130] sm:$0xff] }
 0x10c   : > { %v973_v18 = vpop.f32.mrb[0].mxu0  ;;  %v1101_v20 = vpop.f32.mrb[0].mxu1 }
 0x10d   : > { %v1228_v22 = vadd.f32 %v973_v18, %v343_v16  ;;  %v975_v23 = vpop.f32.mrb[1].mxu0  ;;  %v1260_v24 = vadd.f32 %v1101_v20, %v375_v17  ;;  %v1103_v25 = vpop.f32.mrb[1].mxu1 }
 0x10e   : > { %v976_v26 = vpop.f32.mrb[2].mxu0  ;;  %v1104_v27 = vpop.f32.mrb[2].mxu1 }
 0x10f   : > { %1293 = vst.msk [vmem:[#allocation2] sm:$0xff] %vm278_vm3, %v1228_v22  ;;  %v1229_v28 = vadd.f32 %v976_v26, %v344_v19  ;;  %v978_v29 = vpop.f32.mrb[3].mxu0  ;;  %1325 = vst.msk [vmem:[#allocation2 + $0x100] sm:$0xff] %vm278_vm3, %v1260_v24  ;;  %v1261_v30 = vadd.f32 %v1104_v27, %v376_v21  ;;  %v1106_v31 = vpop.f32.mrb[3].mxu1  ;;  %v350_v19 = vld [vmem:[#allocation2 + $0x38] sm:$0xff] }
 0x111   : > { %1294 = vst.msk [vmem:[#allocation2 + $0x8] sm:$0xff] %vm278_vm3, %v1229_v28  ;;  %1326 = vst.msk [vmem:[#allocation2 + $0x108] sm:$0xff] %vm278_vm3, %v1261_v30 }
 0x114   : > { %v981_v34 = vpop.f32.mrb[4].mxu0  ;;  %v1109_v36 = vpop.f32.mrb[4].mxu1 }
 0x115   : > { %v1230_v37 = vadd.f32 %v981_v34, %v345_v32  ;;  %v983_v38 = vpop.f32.mrb[5].mxu0  ;;  %v1262_v39 = vadd.f32 %v1109_v36, %v377_v33  ;;  %v1111_v40 = vpop.f32.mrb[5].mxu1  ;;  %v382_v32 = vld [vmem:[#allocation2 + $0x138] sm:$0xff] }
 0x116   : > { %v3197_v42 = vld [vmem:[#allocation2] sm:$0xff]  ;;  %v984_v43 = vpop.f32.mrb[6].mxu0  ;;  %v1112_v45 = vpop.f32.mrb[6].mxu1 }
 0x117   : > { %v1392_v44 = vld [vmem:[#allocation2 + $0x100] sm:$0xff]  ;;  %v2440_v46 = vpack.c.bf16 %v3197_v42, %v3197_v42  ;;  %1295 = vst.msk [vmem:[#allocation2 + $0x10] sm:$0xff] %vm278_vm3, %v1230_v37  ;;  %v1231_v47 = vadd.f32 %v984_v43, %v346_v35  ;;  %v986_v48 = vpop.f32.mrb[7].mxu0  ;;  %1327 = vst.msk [vmem:[#allocation2 + $0x110] sm:$0xff] %vm278_vm3, %v1262_v39  ;;  %v1114_v49 = vpop.f32.mrb[7].mxu1  ;;  %v1263_v53 = vadd.f32 %v1112_v45, %v378_v41  ;;  %v352_v41 = vld [vmem:[#allocation2 + $0x48] sm:$0xff] }
 0x118   : > { %v3203_v50 = vld [vmem:[#allocation2 + $0x8] sm:$0xff]  ;;  %v2472_v51 = vpack.c.bf16 %v1392_v44, %v1392_v44  ;;  %v351_v37 = vld [vmem:[#allocation2 + $0x40] sm:$0xff] }
 0x119   : > { %v1393_v52 = vld [vmem:[#allocation2 + $0x108] sm:$0xff]  ;;  %2014 = vst.msk [vmem:[%s3195_s22] sm:$0xf] %vm2013_vm4, %v2440_v46  ;;  %v2441_v54 = vpack.c.bf16 %v3203_v50, %v3203_v50  ;;  %v383_v39 = vld [vmem:[#allocation2 + $0x140] sm:$0xff] }
 0x11a   : > { %1296 = vst.msk [vmem:[#allocation2 + $0x18] sm:$0xff] %vm278_vm3, %v1231_v47  ;;  %1328 = vst.msk [vmem:[#allocation2 + $0x118] sm:$0xff] %vm278_vm3, %v1263_v53  ;;  %v2473_v57 = vpack.c.bf16 %v1393_v52, %v1393_v52 }
 0x11b   : > { %2046 = vst.msk [vmem:[%s3195_s22 + $0x80] sm:$0xf] %vm2013_vm4, %v2472_v51  ;;  %2015 = vst.msk [vmem:[%s3195_s22 + $0x4] sm:$0xf] %vm2013_vm4, %v2441_v54 }
 0x11c   : > { %v989_v58 = vpop.f32.mrb[8].mxu0  ;;  %v1117_v60 = vpop.f32.mrb[8].mxu1  ;;  %2047 = vst.msk [vmem:[%s3195_s22 + $0x84] sm:$0xf] %vm2013_vm4, %v2473_v57 }
 0x11d   : > { %v1232_v61 = vadd.f32 %v989_v58, %v347_v55  ;;  %v991_v62 = vpop.f32.mrb[9].mxu0  ;;  %v1264_v63 = vadd.f32 %v1117_v60, %v379_v56  ;;  %v1119_v0 = vpop.f32.mrb[9].mxu1  ;;  %v384_v60 = vld [vmem:[#allocation2 + $0x148] sm:$0xff] }
 0x11e   : > { %v3217_v1 = vld [vmem:[#allocation2 + $0x10] sm:$0xff]  ;;  %v992_v2 = vpop.f32.mrb[10].mxu0  ;;  %v1120_v4 = vpop.f32.mrb[10].mxu1 }
 0x11f   : > { %v1394_v3 = vld [vmem:[#allocation2 + $0x110] sm:$0xff]  ;;  %v2442_v5 = vpack.c.bf16 %v3217_v1, %v3217_v1  ;;  %1297 = vst.msk [vmem:[#allocation2 + $0x20] sm:$0xff] %vm278_vm3, %v1232_v61  ;;  %v1233_v6 = vadd.f32 %v992_v2, %v348_v59  ;;  %v994_v7 = vpop.f32.mrb[11].mxu0  ;;  %1329 = vst.msk [vmem:[#allocation2 + $0x120] sm:$0xff] %vm278_vm3, %v1264_v63  ;;  %v1122_v8 = vpop.f32.mrb[11].mxu1  ;;  %v1265_v17 = vadd.f32 %v1120_v4, %v380_v11 }
 0x120   : > { %v2474_v10 = vpack.c.bf16 %v1394_v3, %v1394_v3  ;;  %v353_v62 = vld [vmem:[#allocation2 + $0x50] sm:$0xff]  ;;  %v1560_v8 = vmul.f32 %v3203_v50, %v3203_v50 }
 0x121   : > { %v3223_v9 = vld [vmem:[#allocation2 + $0x18] sm:$0xff]  ;;  %2016 = vst.msk [vmem:[%s3195_s22 + $0x8] sm:$0xf] %vm2013_vm4, %v2442_v5  ;;  %v385_v0 = vld [vmem:[#allocation2 + $0x150] sm:$0xff] }
 0x122   : > { %v2443_v12 = vpack.c.bf16 %v3223_v9, %v3223_v9  ;;  %1298 = vst.msk [vmem:[#allocation2 + $0x28] sm:$0xff] %vm278_vm3, %v1233_v6  ;;  %v1395_v13 = vld [vmem:[#allocation2 + $0x118] sm:$0xff]  ;;  %1330 = vst.msk [vmem:[#allocation2 + $0x128] sm:$0xff] %vm278_vm3, %v1265_v17 }
 0x123   : > { %2048 = vst.msk [vmem:[%s3195_s22 + $0x88] sm:$0xf] %vm2013_vm4, %v2474_v10  ;;  %v2475_v16 = vpack.c.bf16 %v1395_v13, %v1395_v13  ;;  %v354_v5 = vld [vmem:[#allocation2 + $0x58] sm:$0xff] }
 0x124   : > { %2017 = vst.msk [vmem:[%s3195_s22 + $0xc] sm:$0xf] %vm2013_vm4, %v2443_v12  ;;  %v997_v18 = vpop.f32.mrb[12].mxu0  ;;  %v1125_v20 = vpop.f32.mrb[12].mxu1 }
 0x125   : > { %v1234_v21 = vadd.f32 %v997_v18, %v349_v14  ;;  %v999_v22 = vpop.f32.mrb[13].mxu0  ;;  %2049 = vst.msk [vmem:[%s3195_s22 + $0x8c] sm:$0xf] %vm2013_vm4, %v2475_v16  ;;  %v1266_v23 = vadd.f32 %v1125_v20, %v381_v15  ;;  %v1127_v24 = vpop.f32.mrb[13].mxu1  ;;  %v1559_v14 = vmul.f32 %v3197_v42, %v3197_v42  ;;  %v1425_v18 = vsel %vm278_vm3, %v3203_v50, 0.0 }
 0x126   : > { %v3237_v25 = vld [vmem:[#allocation2 + $0x20] sm:$0xff]  ;;  %v1000_v26 = vpop.f32.mrb[14].mxu0  ;;  %v1128_v28 = vpop.f32.mrb[14].mxu1  ;;  %v386_v24 = vld [vmem:[#allocation2 + $0x158] sm:$0xff] }
 0x127   : > { %v1396_v27 = vld [vmem:[#allocation2 + $0x120] sm:$0xff]  ;;  %v2444_v29 = vpack.c.bf16 %v3237_v25, %v3237_v25  ;;  %1299 = vst.msk [vmem:[#allocation2 + $0x30] sm:$0xff] %vm278_vm3, %v1234_v21  ;;  %v1235_v30 = vadd.f32 %v1000_v26, %v350_v19  ;;  %v1002_v31 = vpop.f32.mrb[15].mxu0  ;;  %1331 = vst.msk [vmem:[#allocation2 + $0x130] sm:$0xff] %vm278_vm3, %v1266_v23  ;;  %v1130_v33 = vpop.f32.mrb[15].mxu1  ;;  %v1267_v38 = vadd.f32 %v1128_v28, %v382_v32  ;;  %v1424_v28 = vsel %vm278_vm3, %v3197_v42, 0.0 }
 0x128   : > { %v2476_v35 = vpack.c.bf16 %v1396_v27, %v1396_v27  ;;  %v1561_v19 = vmul.f32 %v3217_v1, %v3217_v1  ;;  %v1426_v32 = vadd.f32 %v1425_v18, %v1424_v28  ;;  %v355_v33 = vld [vmem:[#allocation2 + $0x60] sm:$0xff] }
 0x129   : > { %v3243_v34 = vld [vmem:[#allocation2 + $0x28] sm:$0xff]  ;;  %2018 = vst.msk [vmem:[%s3195_s22 + $0x10] sm:$0xf] %vm2013_vm4, %v2444_v29  ;;  %v1624_v29 = vsel %vm278_vm3, %v1560_v8, 0.0 }
 0x12a   : > { %v2445_v36 = vpack.c.bf16 %v3243_v34, %v3243_v34  ;;  %1300 = vst.msk [vmem:[#allocation2 + $0x38] sm:$0xff] %vm278_vm3, %v1235_v30  ;;  %v1397_v43 = vld [vmem:[#allocation2 + $0x128] sm:$0xff]  ;;  %1332 = vst.msk [vmem:[#allocation2 + $0x138] sm:$0xff] %vm278_vm3, %v1267_v38  ;;  %v1427_v30 = vsel %vm278_vm3, %v3217_v1, 0.0  ;;  %v1626_v42 = vsel %vm278_vm3, %v1561_v19, 0.0  ;;  %v387_v1 = vld [vmem:[#allocation2 + $0x160] sm:$0xff] }
 0x12b   : > { %2050 = vst.msk [vmem:[%s3195_s22 + $0x90] sm:$0xf] %vm2013_vm4, %v2476_v35  ;;  %v2477_v47 = vpack.c.bf16 %v1397_v43, %v1397_v43 }
 0x12c   : > { %2019 = vst.msk [vmem:[%s3195_s22 + $0x14] sm:$0xf] %vm2013_vm4, %v2445_v36  ;;  %v1005_v40 = vpop.f32.mrb[16].mxu0  ;;  %v1133_v44 = vpop.f32.mrb[16].mxu1  ;;  %v1623_v36 = vsel %vm278_vm3, %v1559_v14, 0.0 }
 0x12d   : > { %v1236_v45 = vadd.f32 %v1005_v40, %v351_v37  ;;  %v1007_v46 = vpop.f32.mrb[17].mxu0  ;;  %v1135_v48 = vpop.f32.mrb[17].mxu1  ;;  %v1268_v52 = vadd.f32 %v1133_v44, %v383_v39  ;;  %2051 = vst.msk [vmem:[%s3195_s22 + $0x94] sm:$0xf] %vm2013_vm4, %v2477_v47  ;;  %v1562_v37 = vmul.f32 %v3223_v9, %v3223_v9  ;;  %v1625_v38 = vadd.f32 %v1624_v29, %v1623_v36 }
 0x12e   : > { %v3255_v49 = vld [vmem:[#allocation2 + $0x30] sm:$0xff]  ;;  %v1008_v51 = vpop.f32.mrb[18].mxu0  ;;  %v1136_v53 = vpop.f32.mrb[18].mxu1  ;;  %v1428_v39 = vadd.f32 %v1427_v30, %v1426_v32  ;;  %v1563_v46 = vmul.f32 %v3237_v25, %v3237_v25 }
 0x12f   : > { %v2446_v54 = vpack.c.bf16 %v3255_v49, %v3255_v49  ;;  %1301 = vst.msk [vmem:[#allocation2 + $0x40] sm:$0xff] %vm278_vm3, %v1236_v45  ;;  %v1237_v55 = vadd.f32 %v1008_v51, %v352_v41  ;;  %v1010_v56 = vpop.f32.mrb[19].mxu0  ;;  %v1398_v57 = vld [vmem:[#allocation2 + $0x130] sm:$0xff]  ;;  %v1138_v58 = vpop.f32.mrb[19].mxu1  ;;  %1333 = vst.msk [vmem:[#allocation2 + $0x140] sm:$0xff] %vm278_vm3, %v1268_v52  ;;  %v1269_v3 = vadd.f32 %v1136_v53, %v384_v60  ;;  %v356_v41 = vld [vmem:[#allocation2 + $0x68] sm:$0xff] }
 0x130   : > { %v2478_v63 = vpack.c.bf16 %v1398_v57, %v1398_v57  ;;  %v1429_v45 = vsel %vm278_vm3, %v3223_v9, 0.0  ;;  %v1627_v53 = vadd.f32 %v1626_v42, %v1625_v38  ;;  %v1628_v58 = vsel %vm278_vm3, %v1562_v37, 0.0 }
 0x131   : > { %v3262_v59 = vld [vmem:[#allocation2 + $0x38] sm:$0xff]  ;;  %2020 = vst.msk [vmem:[%s3195_s22 + $0x18] sm:$0xf] %vm2013_vm4, %v2446_v54  ;;  %v1431_v9 = vsel %vm278_vm3, %v3237_v25, 0.0  ;;  %v1630_v25 = vsel %vm278_vm3, %v1563_v46, 0.0  ;;  %v1565_v14 = vmul.f32 %v3255_v49, %v3255_v49 }
 0x132   : > { %v2447_v61 = vpack.c.bf16 %v3262_v59, %v3262_v59  ;;  %1302 = vst.msk [vmem:[#allocation2 + $0x48] sm:$0xff] %vm278_vm3, %v1237_v55  ;;  %v1399_v2 = vld [vmem:[#allocation2 + $0x138] sm:$0xff]  ;;  %1334 = vst.msk [vmem:[#allocation2 + $0x148] sm:$0xff] %vm278_vm3, %v1269_v3 }
 0x133   : > { %2052 = vst.msk [vmem:[%s3195_s22 + $0x98] sm:$0xf] %vm2013_vm4, %v2478_v63  ;;  %v2479_v6 = vpack.c.bf16 %v1399_v2, %v1399_v2  ;;  %v1430_v2 = vadd.f32 %v1429_v45, %v1428_v39 }
 0x134   : > { %2021 = vst.msk [vmem:[%s3195_s22 + $0x1c] sm:$0xf] %vm2013_vm4, %v2447_v61  ;;  %v1013_v4 = vpop.f32.mrb[20].mxu0  ;;  %v1141_v7 = vpop.f32.mrb[20].mxu1 }
 0x135   : > { %v1238_v10 = vadd.f32 %v1013_v4, %v353_v62  ;;  %v1015_v11 = vpop.f32.mrb[21].mxu0  ;;  %v1270_v12 = vadd.f32 %v1141_v7, %v385_v0  ;;  %v1143_v13 = vpop.f32.mrb[21].mxu1  ;;  %2053 = vst.msk [vmem:[%s3195_s22 + $0x9c] sm:$0xf] %vm2013_vm4, %v2479_v6  ;;  %v388_v4 = vld [vmem:[#allocation2 + $0x168] sm:$0xff]  ;;  %v1629_v7 = vadd.f32 %v1628_v58, %v1627_v53  ;;  %v1432_v8 = vadd.f32 %v1431_v9, %v1430_v2  ;;  %v391_v53 = vld [vmem:[#allocation2 + $0x180] sm:$0xff] }
 0x136   : > { %v3279_v15 = vld [vmem:[#allocation2 + $0x40] sm:$0xff]  ;;  %v1016_v16 = vpop.f32.mrb[22].mxu0  ;;  %v1144_v17 = vpop.f32.mrb[22].mxu1  ;;  %v1433_v13 = vsel %vm278_vm3, %v3243_v34, 0.0 }
 0x137   : > { %v2448_v20 = vpack.c.bf16 %v3279_v15, %v3279_v15  ;;  %1303 = vst.msk [vmem:[#allocation2 + $0x50] sm:$0xff] %vm278_vm3, %v1238_v10  ;;  %v1239_v21 = vadd.f32 %v1016_v16, %v354_v5  ;;  %v1018_v22 = vpop.f32.mrb[23].mxu0  ;;  %v1400_v23 = vld [vmem:[#allocation2 + $0x140] sm:$0xff]  ;;  %1335 = vst.msk [vmem:[#allocation2 + $0x150] sm:$0xff] %vm278_vm3, %v1270_v12  ;;  %v1146_v26 = vpop.f32.mrb[23].mxu1  ;;  %v1271_v35 = vadd.f32 %v1144_v17, %v386_v24  ;;  %v357_v10 = vld [vmem:[#allocation2 + $0x70] sm:$0xff] }
 0x138   : > { %v2480_v50 = vpack.c.bf16 %v1400_v23, %v1400_v23  ;;  %v1564_v5 = vmul.f32 %v3243_v34, %v3243_v34  ;;  %v389_v12 = vld [vmem:[#allocation2 + $0x170] sm:$0xff]  ;;  %v1631_v18 = vadd.f32 %v1630_v25, %v1629_v7  ;;  %v1435_v23 = vsel %vm278_vm3, %v3255_v49, 0.0 }
 0x139   : > { %v3291_v27 = vld [vmem:[#allocation2 + $0x48] sm:$0xff]  ;;  %2022 = vst.msk [vmem:[%s3195_s22 + $0x20] sm:$0xf] %vm2013_vm4, %v2448_v20  ;;  %v358_v20 = vld [vmem:[#allocation2 + $0x78] sm:$0xff]  ;;  %v1434_v29 = vadd.f32 %v1433_v13, %v1432_v8  ;;  %v1567_v45 = vmul.f32 %v3279_v15, %v3279_v15 }
 0x13a   : > { %v2449_v31 = vpack.c.bf16 %v3291_v27, %v3291_v27  ;;  %1304 = vst.msk [vmem:[#allocation2 + $0x58] sm:$0xff] %vm278_vm3, %v1239_v21  ;;  %v1401_v43 = vld [vmem:[#allocation2 + $0x148] sm:$0xff]  ;;  %1336 = vst.msk [vmem:[#allocation2 + $0x158] sm:$0xff] %vm278_vm3, %v1271_v35  ;;  %v1632_v34 = vsel %vm278_vm3, %v1564_v5, 0.0  ;;  %v1566_v35 = vmul.f32 %v3262_v59, %v3262_v59 }
 0x13b   : > { %2054 = vst.msk [vmem:[%s3195_s22 + $0xa0] sm:$0xf] %vm2013_vm4, %v2480_v50  ;;  %v2481_v51 = vpack.c.bf16 %v1401_v43, %v1401_v43  ;;  %v1633_v39 = vadd.f32 %v1632_v34, %v1631_v18 }
 0x13c   : > { %2023 = vst.msk [vmem:[%s3195_s22 + $0x24] sm:$0xf] %vm2013_vm4, %v2449_v31  ;;  %v1021_v40 = vpop.f32.mrb[24].mxu0  ;;  %v1149_v44 = vpop.f32.mrb[24].mxu1 }
 0x13d   : > { %v1240_v47 = vadd.f32 %v1021_v40, %v355_v33  ;;  %v1023_v48 = vpop.f32.mrb[25].mxu0  ;;  %v1151_v52 = vpop.f32.mrb[25].mxu1  ;;  %v1272_v56 = vadd.f32 %v1149_v44, %v387_v1  ;;  %2055 = vst.msk [vmem:[%s3195_s22 + $0xa4] sm:$0xf] %vm2013_vm4, %v2481_v51  ;;  %v1634_v33 = vsel %vm278_vm3, %v1565_v14, 0.0  ;;  %v390_v1 = vld [vmem:[#allocation2 + $0x178] sm:$0xff]  ;;  %v1436_v40 = vadd.f32 %v1435_v23, %v1434_v29 }
 0x13e   : > { %v3316_v54 = vld [vmem:[#allocation2 + $0x50] sm:$0xff]  ;;  %v1024_v55 = vpop.f32.mrb[26].mxu0  ;;  %v1152_v57 = vpop.f32.mrb[26].mxu1  ;;  %v1437_v44 = vsel %vm278_vm3, %v3262_v59, 0.0  ;;  %v359_v48 = vld [vmem:[#allocation2 + $0x80] sm:$0xff]  ;;  %v1636_v52 = vsel %vm278_vm3, %v1566_v35, 0.0 }
 0x13f   : > { %v2450_v60 = vpack.c.bf16 %v3316_v54, %v3316_v54  ;;  %1305 = vst.msk [vmem:[#allocation2 + $0x60] sm:$0xff] %vm278_vm3, %v1240_v47  ;;  %v1241_v61 = vadd.f32 %v1024_v55, %v356_v41  ;;  %v1026_v62 = vpop.f32.mrb[27].mxu0  ;;  %v3326_v63 = vld [vmem:[#allocation2 + $0x150] sm:$0xff]  ;;  %v1154_v0 = vpop.f32.mrb[27].mxu1  ;;  %1337 = vst.msk [vmem:[#allocation2 + $0x160] sm:$0xff] %vm278_vm3, %v1272_v56  ;;  %v1273_v17 = vadd.f32 %v1152_v57, %v388_v4  ;;  %v1439_v59 = vsel %vm278_vm3, %v3279_v15, 0.0 }
 0x140   : > { %v2482_v11 = vpack.c.bf16 %v3326_v63, %v3326_v63  ;;  %v1635_v47 = vadd.f32 %v1634_v33, %v1633_v39  ;;  %v1438_v55 = vadd.f32 %v1437_v44, %v1436_v40  ;;  %v360_v57 = vld [vmem:[#allocation2 + $0x88] sm:$0xff] }
 0x141   : > { %v3328_v3 = vld [vmem:[#allocation2 + $0x58] sm:$0xff]  ;;  %2024 = vst.msk [vmem:[%s3195_s22 + $0x28] sm:$0xf] %vm2013_vm4, %v2450_v60  ;;  %v1638_v60 = vsel %vm278_vm3, %v1567_v45, 0.0 }
 0x142   : > { %v2451_v6 = vpack.c.bf16 %v3328_v3, %v3328_v3  ;;  %1306 = vst.msk [vmem:[#allocation2 + $0x68] sm:$0xff] %vm278_vm3, %v1241_v61  ;;  %v3347_v16 = vld [vmem:[#allocation2 + $0x158] sm:$0xff]  ;;  %1338 = vst.msk [vmem:[#allocation2 + $0x168] sm:$0xff] %vm278_vm3, %v1273_v17  ;;  %v1568_v61 = vmul.f32 %v3291_v27, %v3291_v27  ;;  %v1637_v4 = vadd.f32 %v1636_v52, %v1635_v47 }
 0x143   : > { %2056 = vst.msk [vmem:[%s3195_s22 + $0xa8] sm:$0xf] %vm2013_vm4, %v2482_v11  ;;  %v2483_v21 = vpack.c.bf16 %v3347_v16, %v3347_v16  ;;  %v1440_v25 = vadd.f32 %v1439_v59, %v1438_v55  ;;  %v1569_v11 = vmul.f32 %v3316_v54, %v3316_v54  ;;  %v1570_v29 = vmul.f32 %v3328_v3, %v3328_v3 }
 0x144   : > { %2025 = vst.msk [vmem:[%s3195_s22 + $0x2c] sm:$0xf] %vm2013_vm4, %v2451_v6  ;;  %v1029_v19 = vpop.f32.mrb[28].mxu0  ;;  %v1157_v22 = vpop.f32.mrb[28].mxu1 }
 0x145   : > { %v1242_v24 = vadd.f32 %v1029_v19, %v357_v10  ;;  %v1031_v26 = vpop.f32.mrb[29].mxu0  ;;  %v1274_v50 = vadd.f32 %v1157_v22, %v389_v12  ;;  %v1159_v28 = vpop.f32.mrb[29].mxu1  ;;  %2057 = vst.msk [vmem:[%s3195_s22 + $0xac] sm:$0xf] %vm2013_vm4, %v2483_v21  ;;  %v1441_v10 = vsel %vm278_vm3, %v3291_v27, 0.0  ;;  %v1639_v19 = vadd.f32 %v1638_v60, %v1637_v4  ;;  %v392_v27 = vld [vmem:[#allocation2 + $0x188] sm:$0xff] }
 0x146   : > { %v3357_v30 = vld [vmem:[#allocation2 + $0x60] sm:$0xff]  ;;  %v1032_v31 = vpop.f32.mrb[30].mxu0  ;;  %v1160_v32 = vpop.f32.mrb[30].mxu1  ;;  %v1640_v21 = vsel %vm278_vm3, %v1568_v61, 0.0  ;;  %v1443_v22 = vsel %vm278_vm3, %v3316_v54, 0.0  ;;  %v1442_v23 = vadd.f32 %v1441_v10, %v1440_v25  ;;  %v1642_v28 = vsel %vm278_vm3, %v1569_v11, 0.0 }
 0x147   : > { %v2452_v49 = vpack.c.bf16 %v3357_v30, %v3357_v30  ;;  %1307 = vst.msk [vmem:[#allocation2 + $0x70] sm:$0xff] %vm278_vm3, %v1242_v24  ;;  %v1243_v36 = vadd.f32 %v1032_v31, %v358_v20  ;;  %v1034_v42 = vpop.f32.mrb[31].mxu0  ;;  %v3367_v37 = vld [vmem:[#allocation2 + $0x160] sm:$0xff]  ;;  %1339 = vst.msk [vmem:[#allocation2 + $0x170] sm:$0xff] %vm278_vm3, %v1274_v50  ;;  %v1162_v38 = vpop.f32.mrb[31].mxu1  ;;  %v1275_v51 = vadd.f32 %v1160_v32, %v390_v1  ;;  %v361_v24 = vld [vmem:[#allocation2 + $0x90] sm:$0xff] }
 0x148   : > { %v2484_v43 = vpack.c.bf16 %v3367_v37, %v3367_v37  ;;  %v393_v50 = vld [vmem:[#allocation2 + $0x190] sm:$0xff]  ;;  %v1641_v32 = vadd.f32 %v1640_v21, %v1639_v19  ;;  %v1444_v33 = vadd.f32 %v1443_v22, %v1442_v23  ;;  %v1445_v1 = vsel %vm278_vm3, %v3328_v3, 0.0  ;;  %v363_v4 = vld [vmem:[#allocation2 + $0xa0] sm:$0xff] }
 0x149   : > { %v3370_v41 = vld [vmem:[#allocation2 + $0x68] sm:$0xff]  ;;  %2026 = vst.msk [vmem:[%s3195_s22 + $0x30] sm:$0xf] %vm2013_vm4, %v2452_v49  ;;  %v362_v49 = vld [vmem:[#allocation2 + $0x98] sm:$0xff]  ;;  %v1571_v38 = vmul.f32 %v3357_v30, %v3357_v30  ;;  %v1447_v3 = vsel %vm278_vm3, %v3357_v30, 0.0 }
 0x14a   : > { %v2453_v46 = vpack.c.bf16 %v3370_v41, %v3370_v41  ;;  %1308 = vst.msk [vmem:[#allocation2 + $0x78] sm:$0xff] %vm278_vm3, %v1243_v36  ;;  %v3390_v58 = vld [vmem:[#allocation2 + $0x168] sm:$0xff]  ;;  %1340 = vst.msk [vmem:[#allocation2 + $0x178] sm:$0xff] %vm278_vm3, %v1275_v51  ;;  %v1643_v45 = vadd.f32 %v1642_v28, %v1641_v32  ;;  %v1644_v51 = vsel %vm278_vm3, %v1570_v29, 0.0 }
 0x14b   : > { %2058 = vst.msk [vmem:[%s3195_s22 + $0xb0] sm:$0xf] %vm2013_vm4, %v2484_v43  ;;  %v2485_v15 = vpack.c.bf16 %v3390_v58, %v3390_v58  ;;  %v1646_v61 = vsel %vm278_vm3, %v1571_v38, 0.0 }
 0x14c   : > { %2027 = vst.msk [vmem:[%s3195_s22 + $0x34] sm:$0xf] %vm2013_vm4, %v2453_v46  ;;  %v1037_v56 = vpop.f32.mrb[32].mxu0  ;;  %v1165_v9 = vpop.f32.mrb[32].mxu1 }
 0x14d   : > { %v1244_v62 = vadd.f32 %v1037_v56, %v359_v48  ;;  %v1039_v0 = vpop.f32.mrb[33].mxu0  ;;  %v1167_v2 = vpop.f32.mrb[33].mxu1  ;;  %v1276_v7 = vadd.f32 %v1165_v9, %v391_v53  ;;  %2059 = vst.msk [vmem:[%s3195_s22 + $0xb4] sm:$0xf] %vm2013_vm4, %v2485_v15  ;;  %v394_v56 = vld [vmem:[#allocation2 + $0x198] sm:$0xff]  ;;  %v1446_v9 = vadd.f32 %v1445_v1, %v1444_v33  ;;  %v1645_v15 = vadd.f32 %v1644_v51, %v1643_v45 }
 0x14e   : > { %v3398_v5 = vld [vmem:[#allocation2 + $0x70] sm:$0xff]  ;;  %v1040_v6 = vpop.f32.mrb[34].mxu0  ;;  %v1168_v8 = vpop.f32.mrb[34].mxu1 }
 0x14f   : > { %v2454_v12 = vpack.c.bf16 %v3398_v5, %v3398_v5  ;;  %1309 = vst.msk [vmem:[#allocation2 + $0x80] sm:$0xff] %vm278_vm3, %v1244_v62  ;;  %v1245_v13 = vadd.f32 %v1040_v6, %v360_v57  ;;  %v1042_v14 = vpop.f32.mrb[35].mxu0  ;;  %v3409_v17 = vld [vmem:[#allocation2 + $0x170] sm:$0xff]  ;;  %v1170_v18 = vpop.f32.mrb[35].mxu1  ;;  %1341 = vst.msk [vmem:[#allocation2 + $0x180] sm:$0xff] %vm278_vm3, %v1276_v7  ;;  %v1277_v31 = vadd.f32 %v1168_v8, %v392_v27  ;;  %v1449_v6 = vsel %vm278_vm3, %v3370_v41, 0.0 }
 0x150   : > { %v2486_v26 = vpack.c.bf16 %v3409_v17, %v3409_v17  ;;  %v1572_v62 = vmul.f32 %v3370_v41, %v3370_v41  ;;  %v1448_v2 = vadd.f32 %v1447_v3, %v1446_v9  ;;  %v1573_v7 = vmul.f32 %v3398_v5, %v3398_v5  ;;  %v395_v8 = vld [vmem:[#allocation2 + $0x1a0] sm:$0xff] }
 0x151   : > { %v3411_v20 = vld [vmem:[#allocation2 + $0x78] sm:$0xff]  ;;  %2028 = vst.msk [vmem:[%s3195_s22 + $0x38] sm:$0xf] %vm2013_vm4, %v2454_v12  ;;  %v1647_v10 = vadd.f32 %v1646_v61, %v1645_v15  ;;  %v364_v12 = vld [vmem:[#allocation2 + $0xa8] sm:$0xff]  ;;  %v1451_v19 = vsel %vm278_vm3, %v3398_v5, 0.0 }
 0x152   : > { %v2455_v34 = vpack.c.bf16 %v3411_v20, %v3411_v20  ;;  %1310 = vst.msk [vmem:[#allocation2 + $0x88] sm:$0xff] %vm278_vm3, %v1245_v13  ;;  %v3429_v54 = vld [vmem:[#allocation2 + $0x178] sm:$0xff]  ;;  %1342 = vst.msk [vmem:[#allocation2 + $0x188] sm:$0xff] %vm278_vm3, %v1277_v31  ;;  %v1648_v18 = vsel %vm278_vm3, %v1572_v62, 0.0  ;;  %v1650_v28 = vsel %vm278_vm3, %v1573_v7, 0.0  ;;  %v1574_v29 = vmul.f32 %v3411_v20, %v3411_v20 }
 0x153   : > { %2060 = vst.msk [vmem:[%s3195_s22 + $0xb8] sm:$0xf] %vm2013_vm4, %v2486_v26  ;;  %v2487_v36 = vpack.c.bf16 %v3429_v54, %v3429_v54  ;;  %v1453_v38 = vsel %vm278_vm3, %v3411_v20, 0.0  ;;  %v398_v15 = vld [vmem:[#allocation2 + $0x1b8] sm:$0xff] }
 0x154   : > { %2029 = vst.msk [vmem:[%s3195_s22 + $0x3c] sm:$0xf] %vm2013_vm4, %v2455_v34  ;;  %v1045_v35 = vpop.f32.mrb[36].mxu0  ;;  %v1173_v42 = vpop.f32.mrb[36].mxu1  ;;  %v1450_v34 = vadd.f32 %v1449_v6, %v1448_v2  ;;  %v1652_v20 = vsel %vm278_vm3, %v1574_v29, 0.0 }
 0x155   : > { %v1246_v39 = vadd.f32 %v1045_v35, %v361_v24  ;;  %v1047_v40 = vpop.f32.mrb[37].mxu0  ;;  %v1278_v43 = vadd.f32 %v1173_v42, %v393_v50  ;;  %v1175_v44 = vpop.f32.mrb[37].mxu1  ;;  %2061 = vst.msk [vmem:[%s3195_s22 + $0xbc] sm:$0xf] %vm2013_vm4, %v2487_v36  ;;  %v396_v35 = vld [vmem:[#allocation2 + $0x1a8] sm:$0xff]  ;;  %v1649_v36 = vadd.f32 %v1648_v18, %v1647_v10 }
 0x156   : > { %v3440_v46 = vld [vmem:[#allocation2 + $0x80] sm:$0xff]  ;;  %v1048_v47 = vpop.f32.mrb[38].mxu0  ;;  %v1176_v48 = vpop.f32.mrb[38].mxu1  ;;  %v1452_v42 = vadd.f32 %v1451_v19, %v1450_v34  ;;  %v365_v44 = vld [vmem:[#allocation2 + $0xb0] sm:$0xff] }
 0x157   : > { %v2456_v52 = vpack.c.bf16 %v3440_v46, %v3440_v46  ;;  %1311 = vst.msk [vmem:[#allocation2 + $0x90] sm:$0xff] %vm278_vm3, %v1246_v39  ;;  %v1247_v59 = vadd.f32 %v1048_v47, %v362_v49  ;;  %v1050_v53 = vpop.f32.mrb[39].mxu0  ;;  %v3450_v55 = vld [vmem:[#allocation2 + $0x180] sm:$0xff]  ;;  %1343 = vst.msk [vmem:[#allocation2 + $0x190] sm:$0xff] %vm278_vm3, %v1278_v43  ;;  %v1178_v57 = vpop.f32.mrb[39].mxu1  ;;  %v1279_v25 = vadd.f32 %v1176_v48, %v394_v56  ;;  %v397_v48 = vld [vmem:[#allocation2 + $0x1b0] sm:$0xff] }
 0x158   : > { %v2488_v30 = vpack.c.bf16 %v3450_v55, %v3450_v55  ;;  %v1575_v39 = vmul.f32 %v3440_v46, %v3440_v46  ;;  %v1651_v43 = vadd.f32 %v1650_v28, %v1649_v36  ;;  %v1455_v51 = vsel %vm278_vm3, %v3440_v46, 0.0  ;;  %v366_v53 = vld [vmem:[#allocation2 + $0xb8] sm:$0xff]  ;;  %v399_v28 = vld [vmem:[#allocation2 + $0x1c0] sm:$0xff] }
 0x159   : > { %v3453_v60 = vld [vmem:[#allocation2 + $0x88] sm:$0xff]  ;;  %2030 = vst.msk [vmem:[%s3195_s22 + $0x40] sm:$0xf] %vm2013_vm4, %v2456_v52  ;;  %v1454_v52 = vadd.f32 %v1453_v38, %v1452_v42 }
 0x15a   : > { %v2457_v0 = vpack.c.bf16 %v3453_v60, %v3453_v60  ;;  %1312 = vst.msk [vmem:[#allocation2 + $0x98] sm:$0xff] %vm278_vm3, %v1247_v59  ;;  %v3473_v13 = vld [vmem:[#allocation2 + $0x188] sm:$0xff]  ;;  %1344 = vst.msk [vmem:[#allocation2 + $0x198] sm:$0xff] %vm278_vm3, %v1279_v25  ;;  %v1654_v9 = vsel %vm278_vm3, %v1575_v39, 0.0  ;;  %v1576_v46 = vmul.f32 %v3453_v60, %v3453_v60  ;;  %v1653_v2 = vadd.f32 %v1652_v20, %v1651_v43 }
 0x15b   : > { %2062 = vst.msk [vmem:[%s3195_s22 + $0xc0] sm:$0xf] %vm2013_vm4, %v2488_v30  ;;  %v2489_v21 = vpack.c.bf16 %v3473_v13, %v3473_v13 }
 0x15c   : > { %2031 = vst.msk [vmem:[%s3195_s22 + $0x44] sm:$0xf] %vm2013_vm4, %v2457_v0  ;;  %v1053_v11 = vpop.f32.mrb[40].mxu0  ;;  %v1181_v14 = vpop.f32.mrb[40].mxu1 }
 0x15d   : > { %v1248_v41 = vadd.f32 %v1053_v11, %v363_v4  ;;  %v1055_v27 = vpop.f32.mrb[41].mxu0  ;;  %v1183_v22 = vpop.f32.mrb[41].mxu1  ;;  %v1280_v26 = vadd.f32 %v1181_v14, %v395_v8  ;;  %2063 = vst.msk [vmem:[%s3195_s22 + $0xc4] sm:$0xf] %vm2013_vm4, %v2489_v21  ;;  %v1456_v4 = vadd.f32 %v1455_v51, %v1454_v52  ;;  %v1457_v8 = vsel %vm278_vm3, %v3453_v60, 0.0 }
 0x15e   : > { %v3481_v23 = vld [vmem:[#allocation2 + $0x90] sm:$0xff]  ;;  %v1056_v24 = vpop.f32.mrb[42].mxu0  ;;  %v1184_v50 = vpop.f32.mrb[42].mxu1  ;;  %v1656_v22 = vsel %vm278_vm3, %v1576_v46, 0.0 }
 0x15f   : > { %v2458_v5 = vpack.c.bf16 %v3481_v23, %v3481_v23  ;;  %1313 = vst.msk [vmem:[#allocation2 + $0xa0] sm:$0xff] %vm278_vm3, %v1248_v41  ;;  %v1249_v31 = vadd.f32 %v1056_v24, %v364_v12  ;;  %v1058_v32 = vpop.f32.mrb[43].mxu0  ;;  %v3491_v33 = vld [vmem:[#allocation2 + $0x190] sm:$0xff]  ;;  %v1186_v49 = vpop.f32.mrb[43].mxu1  ;;  %1345 = vst.msk [vmem:[#allocation2 + $0x1a0] sm:$0xff] %vm278_vm3, %v1280_v26  ;;  %v1281_v47 = vadd.f32 %v1184_v50, %v396_v35  ;;  %v1459_v34 = vsel %vm278_vm3, %v3481_v23, 0.0 }
 0x160   : > { %v2490_v45 = vpack.c.bf16 %v3491_v33, %v3491_v33  ;;  %v1577_v10 = vmul.f32 %v3481_v23, %v3481_v23  ;;  %v1655_v41 = vadd.f32 %v1654_v9, %v1653_v2  ;;  %v1458_v26 = vadd.f32 %v1457_v8, %v1456_v4  ;;  %v367_v50 = vld [vmem:[#allocation2 + $0xc0] sm:$0xff]  ;;  %v368_v49 = vld [vmem:[#allocation2 + $0xc8] sm:$0xff]  ;;  %v369_v8 = vld [vmem:[#allocation2 + $0xd0] sm:$0xff] }
 0x161   : > { %v3493_v1 = vld [vmem:[#allocation2 + $0x98] sm:$0xff]  ;;  %2032 = vst.msk [vmem:[%s3195_s22 + $0x48] sm:$0xf] %vm2013_vm4, %v2458_v5 }
 0x162   : > { %v2459_v40 = vpack.c.bf16 %v3493_v1, %v3493_v1  ;;  %1314 = vst.msk [vmem:[#allocation2 + $0xa8] sm:$0xff] %vm278_vm3, %v1249_v31  ;;  %v3512_v3 = vld [vmem:[#allocation2 + $0x198] sm:$0xff]  ;;  %1346 = vst.msk [vmem:[#allocation2 + $0x1a8] sm:$0xff] %vm278_vm3, %v1281_v47  ;;  %v1658_v29 = vsel %vm278_vm3, %v1577_v10, 0.0  ;;  %v1578_v5 = vmul.f32 %v3493_v1, %v3493_v1  ;;  %v1657_v31 = vadd.f32 %v1656_v22, %v1655_v41  ;;  %v400_v47 = vld [vmem:[#allocation2 + $0x1c8] sm:$0xff] }
 0x163   : > { %2064 = vst.msk [vmem:[%s3195_s22 + $0xc8] sm:$0xf] %vm2013_vm4, %v2490_v45  ;;  %v2491_v56 = vpack.c.bf16 %v3512_v3, %v3512_v3  ;;  %v1460_v32 = vadd.f32 %v1459_v34, %v1458_v26  ;;  %v1461_v38 = vsel %vm278_vm3, %v3493_v1, 0.0  ;;  %v401_v10 = vld [vmem:[#allocation2 + $0x1d0] sm:$0xff] }
 0x164   : > { %2033 = vst.msk [vmem:[%s3195_s22 + $0x4c] sm:$0xf] %vm2013_vm4, %v2459_v40  ;;  %v1061_v59 = vpop.f32.mrb[44].mxu0  ;;  %v1189_v57 = vpop.f32.mrb[44].mxu1 }
 0x165   : > { %v1250_v30 = vadd.f32 %v1061_v59, %v365_v44  ;;  %v1063_v61 = vpop.f32.mrb[45].mxu0  ;;  %v1282_v62 = vadd.f32 %v1189_v57, %v397_v48  ;;  %v1191_v0 = vpop.f32.mrb[45].mxu1  ;;  %2065 = vst.msk [vmem:[%s3195_s22 + $0xcc] sm:$0xf] %vm2013_vm4, %v2491_v56  ;;  %v1659_v48 = vadd.f32 %v1658_v29, %v1657_v31  ;;  %v402_v29 = vld [vmem:[#allocation2 + $0x1d8] sm:$0xff] }
 0x166   : > { %v1380_v25 = vld [vmem:[#allocation2 + $0xa0] sm:$0xff]  ;;  %v1064_v6 = vpop.f32.mrb[46].mxu0  ;;  %v1192_v7 = vpop.f32.mrb[46].mxu1 }
 0x167   : > { %v2460_v11 = vpack.c.bf16 %v1380_v25, %v1380_v25  ;;  %1315 = vst.msk [vmem:[#allocation2 + $0xb0] sm:$0xff] %vm278_vm3, %v1250_v30  ;;  %v1251_v12 = vadd.f32 %v1064_v6, %v366_v53  ;;  %v1066_v14 = vpop.f32.mrb[47].mxu0  ;;  %v3529_v18 = vld [vmem:[#allocation2 + $0x1a0] sm:$0xff]  ;;  %1347 = vst.msk [vmem:[#allocation2 + $0x1b0] sm:$0xff] %vm278_vm3, %v1282_v62  ;;  %v1194_v19 = vpop.f32.mrb[47].mxu1  ;;  %v1283_v21 = vadd.f32 %v1192_v7, %v398_v15  ;;  %v1660_v53 = vsel %vm278_vm3, %v1578_v5, 0.0 }
 0x168   : > { %v2492_v60 = vpack.c.bf16 %v3529_v18, %v3529_v18  ;;  %v1579_v39 = vmul.f32 %v1380_v25, %v1380_v25  ;;  %v1463_v56 = vsel %vm278_vm3, %v1380_v25, 0.0  ;;  %v1462_v30 = vadd.f32 %v1461_v38, %v1460_v32 }
 0x169   : > { %v1381_v27 = vld [vmem:[#allocation2 + $0xa8] sm:$0xff]  ;;  %2034 = vst.msk [vmem:[%s3195_s22 + $0x50] sm:$0xf] %vm2013_vm4, %v2460_v11  ;;  %v1661_v6 = vadd.f32 %v1660_v53, %v1659_v48 }
 0x16a   : > { %v2461_v24 = vpack.c.bf16 %v1381_v27, %v1381_v27  ;;  %1316 = vst.msk [vmem:[#allocation2 + $0xb8] sm:$0xff] %vm278_vm3, %v1251_v12  ;;  %1348 = vst.msk [vmem:[#allocation2 + $0x1b8] sm:$0xff] %vm278_vm3, %v1283_v21  ;;  %v3548_v23 = vld [vmem:[#allocation2 + $0x1a8] sm:$0xff]  ;;  %v1662_v15 = vsel %vm278_vm3, %v1579_v39, 0.0  ;;  %v1580_v2 = vmul.f32 %v1381_v27, %v1381_v27  ;;  %v1464_v7 = vadd.f32 %v1463_v56, %v1462_v30 }
 0x16b   : > { %2066 = vst.msk [vmem:[%s3195_s22 + $0xd0] sm:$0xf] %vm2013_vm4, %v2492_v60  ;;  %v2493_v42 = vpack.c.bf16 %v3548_v23, %v3548_v23  ;;  %v1465_v12 = vsel %vm278_vm3, %v1381_v27, 0.0  ;;  %v1663_v19 = vadd.f32 %v1662_v15, %v1661_v6  ;;  %v370_v60 = vld [vmem:[#allocation2 + $0xd8] sm:$0xff] }
 0x16c   : > { %2035 = vst.msk [vmem:[%s3195_s22 + $0x54] sm:$0xf] %vm2013_vm4, %v2461_v24  ;;  %v1069_v35 = vpop.f32.mrb[48].mxu0  ;;  %v1197_v36 = vpop.f32.mrb[48].mxu1  ;;  %v1664_v22 = vsel %vm278_vm3, %v1580_v2, 0.0  ;;  %v1466_v5 = vadd.f32 %v1465_v12, %v1464_v7 }
 0x16d   : > { %v1252_v40 = vadd.f32 %v1069_v35, %v367_v50  ;;  %v1071_v43 = vpop.f32.mrb[49].mxu0  ;;  %v1284_v44 = vadd.f32 %v1197_v36, %v399_v28  ;;  %v1199_v45 = vpop.f32.mrb[49].mxu1  ;;  %2067 = vst.msk [vmem:[%s3195_s22 + $0xd4] sm:$0xf] %vm2013_vm4, %v2493_v42 }
 0x16e   : > { %v1382_v20 = vld [vmem:[#allocation2 + $0xb0] sm:$0xff]  ;;  %v1072_v51 = vpop.f32.mrb[50].mxu0  ;;  %v1200_v52 = vpop.f32.mrb[50].mxu1  ;;  %v1665_v43 = vadd.f32 %v1664_v22, %v1663_v19 }
 0x16f   : > { %v3554_v59 = vld [vmem:[#allocation2 + $0x1b0] sm:$0xff]  ;;  %v2462_v1 = vpack.c.bf16 %v1382_v20, %v1382_v20  ;;  %1317 = vst.msk [vmem:[#allocation2 + $0xc0] sm:$0xff] %vm278_vm3, %v1252_v40  ;;  %v1253_v57 = vadd.f32 %v1072_v51, %v368_v49  ;;  %v1074_v9 = vpop.f32.mrb[51].mxu0  ;;  %1349 = vst.msk [vmem:[#allocation2 + $0x1c0] sm:$0xff] %vm278_vm3, %v1284_v44  ;;  %v1202_v46 = vpop.f32.mrb[51].mxu1  ;;  %v1285_v62 = vadd.f32 %v1200_v52, %v400_v47  ;;  %v1467_v34 = vsel %vm278_vm3, %v1382_v20, 0.0 }
 0x170   : > { %v2494_v0 = vpack.c.bf16 %v3554_v59, %v3554_v59  ;;  %v1581_v14 = vmul.f32 %v1382_v20, %v1382_v20  ;;  %v1468_v44 = vadd.f32 %v1467_v34, %v1466_v5 }
 0x171   : > { %v1383_v61 = vld [vmem:[#allocation2 + $0xb8] sm:$0xff]  ;;  %2036 = vst.msk [vmem:[%s3195_s22 + $0x58] sm:$0xf] %vm2013_vm4, %v2462_v1  ;;  %v371_v1 = vld [vmem:[#allocation2 + $0xe0] sm:$0xff] }
 0x172   : > { %v2463_v4 = vpack.c.bf16 %v1383_v61, %v1383_v61  ;;  %1318 = vst.msk [vmem:[#allocation2 + $0xc8] sm:$0xff] %vm278_vm3, %v1253_v57  ;;  %v3568_v25 = vld [vmem:[#allocation2 + $0x1b8] sm:$0xff]  ;;  %1350 = vst.msk [vmem:[#allocation2 + $0x1c8] sm:$0xff] %vm278_vm3, %v1285_v62  ;;  %v1666_v49 = vsel %vm278_vm3, %v1581_v14, 0.0  ;;  %v1582_v36 = vmul.f32 %v1383_v61, %v1383_v61  ;;  %v1469_v20 = vsel %vm278_vm3, %v1383_v61, 0.0  ;;  %v403_v57 = vld [vmem:[#allocation2 + $0x1e0] sm:$0xff] }
 0x173   : > { %v2495_v11 = vpack.c.bf16 %v3568_v25, %v3568_v25  ;;  %2068 = vst.msk [vmem:[%s3195_s22 + $0xd8] sm:$0xf] %vm2013_vm4, %v2494_v0  ;;  %v1667_v56 = vadd.f32 %v1666_v49, %v1665_v43  ;;  %v1470_v61 = vadd.f32 %v1469_v20, %v1468_v44  ;;  %v372_v0 = vld [vmem:[#allocation2 + $0xe8] sm:$0xff]  ;;  %v405_v43 = vld [vmem:[#allocation2 + $0x1f0] sm:$0xff] }
 0x174   : > { %2037 = vst.msk [vmem:[%s3195_s22 + $0x5c] sm:$0xf] %vm2013_vm4, %v2463_v4  ;;  %v1077_v41 = vpop.f32.mrb[52].mxu0  ;;  %v1205_v21 = vpop.f32.mrb[52].mxu1  ;;  %v1668_v46 = vsel %vm278_vm3, %v1582_v36, 0.0 }
 0x175   : > { %2069 = vst.msk [vmem:[%s3195_s22 + $0xdc] sm:$0xf] %vm2013_vm4, %v2495_v11  ;;  %v1254_v24 = vadd.f32 %v1077_v41, %v369_v8  ;;  %v1079_v26 = vpop.f32.mrb[53].mxu0  ;;  %v1286_v50 = vadd.f32 %v1205_v21, %v401_v10  ;;  %v1207_v28 = vpop.f32.mrb[53].mxu1  ;;  %v404_v11 = vld [vmem:[#allocation2 + $0x1e8] sm:$0xff]  ;;  %v1669_v12 = vadd.f32 %v1668_v46, %v1667_v56 }
 0x176   : > { %v1384_v27 = vld [vmem:[#allocation2 + $0xc0] sm:$0xff]  ;;  %v1080_v31 = vpop.f32.mrb[54].mxu0  ;;  %v1208_v32 = vpop.f32.mrb[54].mxu1 }
 0x177   : > { %v3582_v35 = vld [vmem:[#allocation2 + $0x1c0] sm:$0xff]  ;;  %v2464_v42 = vpack.c.bf16 %v1384_v27, %v1384_v27  ;;  %1319 = vst.msk [vmem:[#allocation2 + $0xd0] sm:$0xff] %vm278_vm3, %v1254_v24  ;;  %v1255_v38 = vadd.f32 %v1080_v31, %v370_v60  ;;  %v1082_v39 = vpop.f32.mrb[55].mxu0  ;;  %1351 = vst.msk [vmem:[#allocation2 + $0x1d0] sm:$0xff] %vm278_vm3, %v1286_v50  ;;  %v1210_v40 = vpop.f32.mrb[55].mxu1  ;;  %v1287_v47 = vadd.f32 %v1208_v32, %v402_v29  ;;  %v1471_v30 = vsel %vm278_vm3, %v1384_v27, 0.0 }
 0x178   : > { %v2496_v48 = vpack.c.bf16 %v3582_v35, %v3582_v35  ;;  %v1583_v51 = vmul.f32 %v1384_v27, %v1384_v27  ;;  %v1472_v14 = vadd.f32 %v1471_v30, %v1470_v61  ;;  %v373_v40 = vld [vmem:[#allocation2 + $0xf0] sm:$0xff]  ;;  %v406_v30 = vld [vmem:[#allocation2 + $0x1f8] sm:$0xff] }
 0x179   : > { %v1385_v45 = vld [vmem:[#allocation2 + $0xc8] sm:$0xff]  ;;  %2038 = vst.msk [vmem:[%s3195_s22 + $0x60] sm:$0xf] %vm2013_vm4, %v2464_v42 }
 0x17a   : > { %v2465_v52 = vpack.c.bf16 %v1385_v45, %v1385_v45  ;;  %1320 = vst.msk [vmem:[#allocation2 + $0xd8] sm:$0xff] %vm278_vm3, %v1255_v38  ;;  %v3593_v53 = vld [vmem:[#allocation2 + $0x1c8] sm:$0xff]  ;;  %1352 = vst.msk [vmem:[#allocation2 + $0x1d8] sm:$0xff] %vm278_vm3, %v1287_v47  ;;  %v1670_v2 = vsel %vm278_vm3, %v1583_v51, 0.0  ;;  %v1584_v4 = vmul.f32 %v1385_v45, %v1385_v45  ;;  %v1473_v22 = vsel %vm278_vm3, %v1385_v45, 0.0  ;;  %v374_v51 = vld [vmem:[#allocation2 + $0xf8] sm:$0xff] }
 0x17b   : > { %v2497_v9 = vpack.c.bf16 %v3593_v53, %v3593_v53  ;;  %2070 = vst.msk [vmem:[%s3195_s22 + $0xe0] sm:$0xf] %vm2013_vm4, %v2496_v48  ;;  %v1671_v29 = vadd.f32 %v1670_v2, %v1669_v12  ;;  %v1474_v38 = vadd.f32 %v1473_v22, %v1472_v14 }
 0x17c   : > { %2039 = vst.msk [vmem:[%s3195_s22 + $0x64] sm:$0xf] %vm2013_vm4, %v2465_v52  ;;  %v1085_v62 = vpop.f32.mrb[56].mxu0  ;;  %v1213_v15 = vpop.f32.mrb[56].mxu1  ;;  %v1672_v32 = vsel %vm278_vm3, %v1584_v4, 0.0 }
 0x17d   : > { %2071 = vst.msk [vmem:[%s3195_s22 + $0xe4] sm:$0xf] %vm2013_vm4, %v2497_v9  ;;  %v1256_v6 = vadd.f32 %v1085_v62, %v371_v1  ;;  %v1087_v7 = vpop.f32.mrb[57].mxu0  ;;  %v1288_v8 = vadd.f32 %v1213_v15, %v403_v57  ;;  %v1215_v10 = vpop.f32.mrb[57].mxu1  ;;  %v1673_v47 = vadd.f32 %v1672_v32, %v1671_v29 }
 0x17e   : > { %v1386_v19 = vld [vmem:[#allocation2 + $0xd0] sm:$0xff]  ;;  %v1088_v41 = vpop.f32.mrb[58].mxu0  ;;  %v1216_v60 = vpop.f32.mrb[58].mxu1 }
 0x17f   : > { %v3607_v21 = vld [vmem:[#allocation2 + $0x1d0] sm:$0xff]  ;;  %v1585_v34 = vmul.f32 %v1386_v19, %v1386_v19  ;;  %v2466_v24 = vpack.c.bf16 %v1386_v19, %v1386_v19  ;;  %1321 = vst.msk [vmem:[#allocation2 + $0xe0] sm:$0xff] %vm278_vm3, %v1256_v6  ;;  %v1257_v26 = vadd.f32 %v1088_v41, %v372_v0  ;;  %v1090_v50 = vpop.f32.mrb[59].mxu0  ;;  %1353 = vst.msk [vmem:[#allocation2 + $0x1e0] sm:$0xff] %vm278_vm3, %v1288_v8  ;;  %v1218_v28 = vpop.f32.mrb[59].mxu1  ;;  %v1475_v49 = vsel %vm278_vm3, %v1386_v19, 0.0 }
 0x180   : > { %v1289_v27 = vadd.f32 %v1216_v60, %v404_v11  ;;  %v2498_v31 = vpack.c.bf16 %v3607_v21, %v3607_v21  ;;  %v1476_v48 = vadd.f32 %v1475_v49, %v1474_v38 }
 0x181   : > { %v1387_v5 = vld [vmem:[#allocation2 + $0xd8] sm:$0xff]  ;;  %2040 = vst.msk [vmem:[%s3195_s22 + $0x68] sm:$0xf] %vm2013_vm4, %v2466_v24  ;;  %v1674_v45 = vsel %vm278_vm3, %v1585_v34, 0.0 }
 0x182   : > { %v2467_v36 = vpack.c.bf16 %v1387_v5, %v1387_v5  ;;  %1322 = vst.msk [vmem:[#allocation2 + $0xe8] sm:$0xff] %vm278_vm3, %v1257_v26  ;;  %v3619_v42 = vld [vmem:[#allocation2 + $0x1d8] sm:$0xff]  ;;  %v1586_v39 = vmul.f32 %v1387_v5, %v1387_v5  ;;  %1354 = vst.msk [vmem:[#allocation2 + $0x1e8] sm:$0xff] %vm278_vm3, %v1289_v27  ;;  %v1477_v56 = vsel %vm278_vm3, %v1387_v5, 0.0  ;;  %v1675_v61 = vadd.f32 %v1674_v45, %v1673_v47 }
 0x183   : > { %v2499_v44 = vpack.c.bf16 %v3619_v42, %v3619_v42  ;;  %2072 = vst.msk [vmem:[%s3195_s22 + $0xe8] sm:$0xf] %vm2013_vm4, %v2498_v31  ;;  %v1478_v14 = vadd.f32 %v1477_v56, %v1476_v48 }
 0x184   : > { %2041 = vst.msk [vmem:[%s3195_s22 + $0x6c] sm:$0xf] %vm2013_vm4, %v2467_v36  ;;  %v1093_v20 = vpop.f32.mrb[60].mxu0  ;;  %v1221_v52 = vpop.f32.mrb[60].mxu1  ;;  %v1676_v62 = vsel %vm278_vm3, %v1586_v39, 0.0 }
 0x185   : > { %2073 = vst.msk [vmem:[%s3195_s22 + $0xec] sm:$0xf] %vm2013_vm4, %v2499_v44  ;;  %v1258_v1 = vadd.f32 %v1093_v20, %v373_v40  ;;  %v1095_v57 = vpop.f32.mrb[61].mxu0  ;;  %v1290_v9 = vadd.f32 %v1221_v52, %v405_v43  ;;  %v1223_v46 = vpop.f32.mrb[61].mxu1  ;;  %v1677_v50 = vadd.f32 %v1676_v62, %v1675_v61  ;;  %v2693_v43 = vld [vmem:[#allocation2 + $0x100] sm:$0xff]  ;;  %v2694_v62 = vld [vmem:[#allocation2 + $0x108] sm:$0xff] }
 0x186   : > { %v1388_v0 = vld [vmem:[#allocation2 + $0xe0] sm:$0xff]  ;;  %v1096_v15 = vpop.f32.mrb[62].mxu0  ;;  %v1224_v2 = vpop.f32.mrb[62].mxu1  ;;  %v1591_v44 = vmul.f32 %v2693_v43, %v2693_v43  ;;  %v1487_v61 = vsel %vm278_vm3, %v2693_v43, 0.0 }
 0x187   : > { %v3633_v4 = vld [vmem:[#allocation2 + $0x1e0] sm:$0xff]  ;;  %v1479_v6 = vsel %vm278_vm3, %v1388_v0, 0.0  ;;  %v1587_v7 = vmul.f32 %v1388_v0, %v1388_v0  ;;  %v2468_v8 = vpack.c.bf16 %v1388_v0, %v1388_v0  ;;  %1323 = vst.msk [vmem:[#allocation2 + $0xf0] sm:$0xff] %vm278_vm3, %v1258_v1  ;;  %v1259_v10 = vadd.f32 %v1096_v15, %v374_v51  ;;  %v1098_v11 = vpop.f32.mrb[63].mxu0  ;;  %1355 = vst.msk [vmem:[#allocation2 + $0x1f0] sm:$0xff] %vm278_vm3, %v1290_v9  ;;  %v1226_v12 = vpop.f32.mrb[63].mxu1 }
 0x188   : > { %v1291_v41 = vadd.f32 %v1224_v2, %v406_v30  ;;  %v2500_v60 = vpack.c.bf16 %v3633_v4, %v3633_v4  ;;  %v1480_v28 = vadd.f32 %v1479_v6, %v1478_v14  ;;  %v1592_v0 = vmul.f32 %v2694_v62, %v2694_v62 }
 0x189   : > { %v1389_v19 = vld [vmem:[#allocation2 + $0xe8] sm:$0xff]  ;;  %v1678_v22 = vsel %vm278_vm3, %v1587_v7, 0.0  ;;  %2042 = vst.msk [vmem:[%s3195_s22 + $0x70] sm:$0xf] %vm2013_vm4, %v2468_v8  ;;  %v1686_v7 = vsel %vm278_vm3, %v1591_v44, 0.0  ;;  %v1489_v8 = vsel %vm278_vm3, %v2694_v62, 0.0 }
 0x18a   : > { %v1588_v34 = vmul.f32 %v1389_v19, %v1389_v19  ;;  %v2469_v24 = vpack.c.bf16 %v1389_v19, %v1389_v19  ;;  %1324 = vst.msk [vmem:[#allocation2 + $0xf8] sm:$0xff] %vm278_vm3, %v1259_v10  ;;  %v3644_v26 = vld [vmem:[#allocation2 + $0x1e8] sm:$0xff]  ;;  %1356 = vst.msk [vmem:[#allocation2 + $0x1f8] sm:$0xff] %vm278_vm3, %v1291_v41  ;;  %v1481_v5 = vsel %vm278_vm3, %v1389_v19, 0.0  ;;  %v1679_v27 = vadd.f32 %v1678_v22, %v1677_v50  ;;  %v2695_v10 = vld [vmem:[#allocation2 + $0x110] sm:$0xff] }
 0x18b   : > { %v2501_v29 = vpack.c.bf16 %v3644_v26, %v3644_v26  ;;  %2074 = vst.msk [vmem:[%s3195_s22 + $0xf0] sm:$0xf] %vm2013_vm4, %v2500_v60  ;;  %v1482_v32 = vadd.f32 %v1481_v5, %v1480_v28  ;;  %v1593_v11 = vmul.f32 %v2695_v10, %v2695_v10  ;;  %v1688_v19 = vsel %vm278_vm3, %v1592_v0, 0.0  ;;  %v2696_v60 = vld [vmem:[#allocation2 + $0x118] sm:$0xff]  ;;  %v2701_v0 = vld [vmem:[#allocation2 + $0x140] sm:$0xff] }
 0x18c   : > { %2043 = vst.msk [vmem:[%s3195_s22 + $0x74] sm:$0xf] %vm2013_vm4, %v2469_v24  ;;  %v1680_v31 = vsel %vm278_vm3, %v1588_v34, 0.0  ;;  %v1491_v41 = vsel %vm278_vm3, %v2695_v10, 0.0  ;;  %v1594_v22 = vmul.f32 %v2696_v60, %v2696_v60  ;;  %v1493_v28 = vsel %vm278_vm3, %v2696_v60, 0.0  ;;  %v2702_v10 = vld [vmem:[#allocation2 + $0x148] sm:$0xff] }
 0x18d   : > { %2075 = vst.msk [vmem:[%s3195_s22 + $0xf4] sm:$0xf] %vm2013_vm4, %v2501_v29  ;;  %v1681_v45 = vadd.f32 %v1680_v31, %v1679_v27  ;;  %v1690_v50 = vsel %vm278_vm3, %v1593_v11, 0.0  ;;  %v2697_v29 = vld [vmem:[#allocation2 + $0x120] sm:$0xff]  ;;  %v1600_v11 = vmul.f32 %v2702_v10, %v2702_v10  ;;  %v1601_v60 = vmul.f32 %v3326_v63, %v3326_v63 }
 0x18e   : > { %v1390_v49 = vld [vmem:[#allocation2 + $0xf0] sm:$0xff]  ;;  %v1595_v5 = vmul.f32 %v2697_v29, %v2697_v29 }
 0x18f   : > { %v3657_v36 = vld [vmem:[#allocation2 + $0x1f0] sm:$0xff]  ;;  %v1483_v38 = vsel %vm278_vm3, %v1390_v49, 0.0  ;;  %v1589_v39 = vmul.f32 %v1390_v49, %v1390_v49  ;;  %v2470_v40 = vpack.c.bf16 %v1390_v49, %v1390_v49  ;;  %v1495_v49 = vsel %vm278_vm3, %v2697_v29, 0.0 }
 0x190   : > { %v1484_v47 = vadd.f32 %v1483_v38, %v1482_v32  ;;  %v2502_v20 = vpack.c.bf16 %v3657_v36, %v3657_v36  ;;  %v1692_v32 = vsel %vm278_vm3, %v1594_v22, 0.0  ;;  %v2698_v38 = vld [vmem:[#allocation2 + $0x128] sm:$0xff]  ;;  %v1694_v44 = vsel %vm278_vm3, %v1595_v5, 0.0 }
 0x191   : > { %v1391_v48 = vld [vmem:[#allocation2 + $0xf8] sm:$0xff]  ;;  %v1682_v51 = vsel %vm278_vm3, %v1589_v39, 0.0  ;;  %2044 = vst.msk [vmem:[%s3195_s22 + $0x78] sm:$0xf] %vm2013_vm4, %v2470_v40  ;;  %v1596_v39 = vmul.f32 %v2698_v38, %v2698_v38 }
 0x192   : > { %v1485_v52 = vsel %vm278_vm3, %v1391_v48, 0.0  ;;  %v1590_v56 = vmul.f32 %v1391_v48, %v1391_v48  ;;  %v2471_v1 = vpack.c.bf16 %v1391_v48, %v1391_v48  ;;  %v3666_v57 = vld [vmem:[#allocation2 + $0x1f8] sm:$0xff]  ;;  %v1683_v9 = vadd.f32 %v1682_v51, %v1681_v45  ;;  %2076 = vst.msk [vmem:[%s3195_s22 + $0xf8] sm:$0xf] %vm2013_vm4, %v2502_v20 }
 0x193   : > { %v1486_v46 = vadd.f32 %v1485_v52, %v1484_v47  ;;  %v2503_v30 = vpack.c.bf16 %v3666_v57, %v3666_v57  ;;  %v1497_v45 = vsel %vm278_vm3, %v2698_v38, 0.0  ;;  %v2699_v47 = vld [vmem:[#allocation2 + $0x130] sm:$0xff]  ;;  %v1696_v52 = vsel %vm278_vm3, %v1596_v39, 0.0 }
 0x194   : > { %v1684_v15 = vsel %vm278_vm3, %v1590_v56, 0.0  ;;  %2045 = vst.msk [vmem:[%s3195_s22 + $0x7c] sm:$0xf] %vm2013_vm4, %v2471_v1  ;;  %v1597_v48 = vmul.f32 %v2699_v47, %v2699_v47  ;;  %v1499_v56 = vsel %vm278_vm3, %v2699_v47, 0.0  ;;  %v2700_v1 = vld [vmem:[#allocation2 + $0x138] sm:$0xff]  ;;  %v1605_v47 = vmul.f32 %v3409_v17, %v3409_v17 }
 0x195   : > { %v1488_v2 = vadd.f32 %v1487_v61, %v1486_v46  ;;  %v1685_v6 = vadd.f32 %v1684_v15, %v1683_v9  ;;  %2077 = vst.msk [vmem:[%s3195_s22 + $0xfc] sm:$0xf] %vm2013_vm4, %v2503_v30  ;;  %v1598_v9 = vmul.f32 %v2700_v1, %v2700_v1  ;;  %v1501_v62 = vsel %vm278_vm3, %v2700_v1, 0.0  ;;  %s2709_s22 = scalar_lea.vmem %s2708_s21, 32 }
 0x196   : > { %v1698_v61 = vsel %vm278_vm3, %v1597_v48, 0.0  ;;  %v1599_v15 = vmul.f32 %v2701_v0, %v2701_v0  ;;  %p2711_p2 = scmp.lt.s32.totalorder %s2709_s22, %s2703_s13 }
 0x197   : > { %v1490_v12 = vadd.f32 %v1489_v8, %v1488_v2  ;;  %v1687_v14 = vadd.f32 %v1686_v7, %v1685_v6  ;;  %v1700_v7 = vsel %vm278_vm3, %v1598_v9, 0.0  ;;  %v1503_v8 = vsel %vm278_vm3, %v2701_v0, 0.0 }
 0x198   : > { %v1714_v9 = vsel %vm278_vm3, %v1605_v47, 0.0  ;;  %v1608_v0 = vmul.f32 %v3473_v13, %v3473_v13  ;;  %p2712_p3 = por %p2711_p2, %p2710_p1 }
 0x199   : > { %v1492_v34 = vadd.f32 %v1491_v41, %v1490_v12  ;;  %v1689_v24 = vadd.f32 %v1688_v19, %v1687_v14  ;;  %v1702_v19 = vsel %vm278_vm3, %v1599_v15, 0.0  ;;  %v1505_v41 = vsel %vm278_vm3, %v2702_v10, 0.0 }
 0x19a   : > { %p2713_p5 = pnand %p2712_p3, %p2706_p0 }
 0x19b   : > { %v1494_v27 = vadd.f32 %v1493_v28, %v1492_v34  ;;  %v1691_v31 = vadd.f32 %v1690_v50, %v1689_v24  ;;  %v1704_v24 = vsel %vm278_vm3, %v1600_v11, 0.0  ;;  %v1507_v50 = vsel %vm278_vm3, %v3326_v63, 0.0 }
 0x19c   : > { %v1602_v28 = vmul.f32 %v3347_v16, %v3347_v16  ;;  %v1511_v63 = vsel %vm278_vm3, %v3367_v37, 0.0  ;;  %v1720_v11 = vsel %vm278_vm3, %v1608_v0, 0.0  ;;  %v1620_v0 = vmul.f32 %v3644_v26, %v3644_v26 }
 0x19d   : > { %v1496_v40 = vadd.f32 %v1495_v49, %v1494_v27  ;;  %v1693_v43 = vadd.f32 %v1692_v32, %v1691_v31  ;;  %v1706_v27 = vsel %vm278_vm3, %v1601_v60, 0.0  ;;  %v1509_v31 = vsel %vm278_vm3, %v3347_v16, 0.0 }
 0x19e   : > { %v1603_v32 = vmul.f32 %v3367_v37, %v3367_v37  ;;  %v1708_v39 = vsel %vm278_vm3, %v1602_v28, 0.0  ;;  %v1513_v16 = vsel %vm278_vm3, %v3390_v58, 0.0  ;;  %v1515_v37 = vsel %vm278_vm3, %v3409_v17, 0.0 }
 0x19f   : > { %v1498_v20 = vadd.f32 %v1497_v45, %v1496_v40  ;;  %v1695_v51 = vadd.f32 %v1694_v44, %v1693_v43  ;;  %v1604_v40 = vmul.f32 %v3390_v58, %v3390_v58  ;;  %v1517_v58 = vsel %vm278_vm3, %v3429_v54, 0.0 }
 0x1a0   : > { %v1710_v45 = vsel %vm278_vm3, %v1603_v32, 0.0  ;;  %v1519_v17 = vsel %vm278_vm3, %v3450_v55, 0.0 }
 0x1a1   : > { %v1500_v46 = vadd.f32 %v1499_v56, %v1498_v20  ;;  %v1697_v30 = vadd.f32 %v1696_v52, %v1695_v51  ;;  %v1712_v51 = vsel %vm278_vm3, %v1604_v40, 0.0  ;;  %v1606_v52 = vmul.f32 %v3429_v54, %v3429_v54 }
 0x1a2   : > { %v1521_v54 = vsel %vm278_vm3, %v3473_v13, 0.0  ;;  %v1611_v13 = vmul.f32 %v3529_v18, %v3529_v18  ;;  %v1615_v40 = vmul.f32 %v3582_v35, %v3582_v35 }
 0x1a3   : > { %v1502_v2 = vadd.f32 %v1501_v62, %v1500_v46  ;;  %v1699_v6 = vadd.f32 %v1698_v61, %v1697_v30  ;;  %v1607_v46 = vmul.f32 %v3450_v55, %v3450_v55  ;;  %v1716_v62 = vsel %vm278_vm3, %v1606_v52, 0.0 }
 0x1a4   : > { %v1523_v55 = vsel %vm278_vm3, %v3491_v33, 0.0 }
 0x1a5   : > { %v1701_v12 = vadd.f32 %v1700_v7, %v1699_v6  ;;  %v1504_v14 = vadd.f32 %v1503_v8, %v1502_v2  ;;  %v1718_v6 = vsel %vm278_vm3, %v1607_v46, 0.0  ;;  %v1609_v7 = vmul.f32 %v3491_v33, %v3491_v33 }
 0x1a6   : > { %v1612_v33 = vmul.f32 %v3548_v23, %v3548_v23 }
 0x1a7   : > { %v1506_v22 = vadd.f32 %v1505_v41, %v1504_v14  ;;  %v1703_v34 = vadd.f32 %v1702_v19, %v1701_v12  ;;  %v1610_v12 = vmul.f32 %v3512_v3, %v3512_v3  ;;  %v1525_v41 = vsel %vm278_vm3, %v3512_v3, 0.0 }
 0x1a8   : > { %v1722_v60 = vsel %vm278_vm3, %v1609_v7, 0.0  ;;  %v1529_v3 = vsel %vm278_vm3, %v3548_v23, 0.0  ;;  %v1533_v23 = vsel %vm278_vm3, %v3568_v25, 0.0  ;;  %v1547_v7 = vsel %vm278_vm3, %v3657_v36, 0.0 }
 0x1a9   : > { %v1508_v29 = vadd.f32 %v1507_v50, %v1506_v22  ;;  %v1705_v5 = vadd.f32 %v1704_v24, %v1703_v34  ;;  %v1527_v24 = vsel %vm278_vm3, %v3529_v18, 0.0  ;;  %v1724_v50 = vsel %vm278_vm3, %v1610_v12, 0.0 }
 0x1aa   : > { %v1531_v18 = vsel %vm278_vm3, %v3554_v59, 0.0 }
 0x1ab   : > { %v1510_v49 = vadd.f32 %v1509_v31, %v1508_v29  ;;  %v1707_v38 = vadd.f32 %v1706_v27, %v1705_v5  ;;  %v1613_v5 = vmul.f32 %v3554_v59, %v3554_v59  ;;  %v1726_v27 = vsel %vm278_vm3, %v1611_v13, 0.0 }
 0x1ac   : > { %v1535_v59 = vsel %vm278_vm3, %v3582_v35, 0.0  ;;  %v1539_v35 = vsel %vm278_vm3, %v3607_v21, 0.0 }
 0x1ad   : > { %v1512_v43 = vadd.f32 %v1511_v63, %v1510_v49  ;;  %v1709_v44 = vadd.f32 %v1708_v39, %v1707_v38  ;;  %v1614_v49 = vmul.f32 %v3568_v25, %v3568_v25  ;;  %v1728_v38 = vsel %vm278_vm3, %v1612_v33, 0.0 }
 0x1ae   : > { %v1537_v25 = vsel %vm278_vm3, %v3593_v53, 0.0 }
 0x1af   : > { %v1514_v48 = vadd.f32 %v1513_v16, %v1512_v43  ;;  %v1711_v20 = vadd.f32 %v1710_v45, %v1709_v44  ;;  %v1730_v43 = vsel %vm278_vm3, %v1613_v5, 0.0  ;;  %v1616_v16 = vmul.f32 %v3593_v53, %v3593_v53 }
 0x1b0   : > { %v1732_v47 = vsel %vm278_vm3, %v1614_v49, 0.0  ;;  %v1541_v53 = vsel %vm278_vm3, %v3619_v42, 0.0 }
 0x1b1   : > { %v1516_v56 = vadd.f32 %v1515_v37, %v1514_v48  ;;  %v1713_v1 = vadd.f32 %v1712_v51, %v1711_v20  ;;  %v1617_v51 = vmul.f32 %v3607_v21, %v3607_v21  ;;  %v1734_v37 = vsel %vm278_vm3, %v1615_v40, 0.0 }
 0x1b2   : > { %v1543_v21 = vsel %vm278_vm3, %v3633_v4, 0.0 }
 0x1b3   : > { %v1518_v30 = vadd.f32 %v1517_v58, %v1516_v56  ;;  %v1715_v61 = vadd.f32 %v1714_v9, %v1713_v1  ;;  %v1618_v1 = vmul.f32 %v3619_v42, %v3619_v42  ;;  %v1736_v9 = vsel %vm278_vm3, %v1616_v16, 0.0 }
 0x1b5   : > { %v1520_v15 = vadd.f32 %v1519_v17, %v1518_v30  ;;  %v1717_v2 = vadd.f32 %v1716_v62, %v1715_v61  ;;  %v1619_v30 = vmul.f32 %v3633_v4, %v3633_v4  ;;  %v1738_v61 = vsel %vm278_vm3, %v1617_v51, 0.0 }
 0x1b7   : > { %v1719_v8 = vadd.f32 %v1718_v6, %v1717_v2  ;;  %v1522_v10 = vadd.f32 %v1521_v54, %v1520_v15  ;;  %v1621_v15 = vmul.f32 %v3657_v36, %v3657_v36  ;;  %v1740_v2 = vsel %vm278_vm3, %v1618_v1, 0.0 }
 0x1b8   : > { %v1545_v54 = vsel %vm278_vm3, %v3644_v26, 0.0  ;;  %v1549_v26 = vsel %vm278_vm3, %v3666_v57, 0.0 }
 0x1b9   : > { %v1524_v14 = vadd.f32 %v1523_v55, %v1522_v10  ;;  %v1721_v19 = vadd.f32 %v1720_v11, %v1719_v8  ;;  %v1742_v8 = vsel %vm278_vm3, %v1619_v30, 0.0  ;;  %v1622_v11 = vmul.f32 %v3666_v57, %v3666_v57 }
 0x1ba   : > { %v1744_v55 = vsel %vm278_vm3, %v1620_v0, 0.0  ;;  %v1746_v12 = vsel %vm278_vm3, %v1621_v15, 0.0 }
 0x1bb   : > { %v1526_v22 = vadd.f32 %v1525_v41, %v1524_v14  ;;  %v1723_v34 = vadd.f32 %v1722_v60, %v1721_v19  ;;  %v1748_v36 = vsel %vm278_vm3, %v1622_v11, 0.0 }
 0x1bd   : > { %v1528_v28 = vadd.f32 %v1527_v24, %v1526_v22  ;;  %v1725_v29 = vadd.f32 %v1724_v50, %v1723_v34 }
 0x1bf   : > { %v1530_v31 = vadd.f32 %v1529_v3, %v1528_v28  ;;  %v1727_v32 = vadd.f32 %v1726_v27, %v1725_v29 }
 0x1c1   : > { %v1532_v39 = vadd.f32 %v1531_v18, %v1530_v31  ;;  %v1729_v63 = vadd.f32 %v1728_v38, %v1727_v32 }
 0x1c3   : > { %v1534_v44 = vadd.f32 %v1533_v23, %v1532_v39  ;;  %v1731_v45 = vadd.f32 %v1730_v43, %v1729_v63 }
 0x1c5   : > { %v1536_v48 = vadd.f32 %v1535_v59, %v1534_v44  ;;  %v1733_v20 = vadd.f32 %v1732_v47, %v1731_v45 }
 0x1c7   : > { %v1538_v52 = vadd.f32 %v1537_v25, %v1536_v48  ;;  %v1735_v56 = vadd.f32 %v1734_v37, %v1733_v20 }
 0x1c9   : > { %v1540_v58 = vadd.f32 %v1539_v35, %v1538_v52  ;;  %v1737_v46 = vadd.f32 %v1736_v9, %v1735_v56 }
 0x1cb   : > { %v1542_v62 = vadd.f32 %v1541_v53, %v1540_v58  ;;  %v1739_v17 = vadd.f32 %v1738_v61, %v1737_v46 }
 0x1cd   : > { %v1544_v6 = vadd.f32 %v1543_v21, %v1542_v62  ;;  %v1741_v42 = vadd.f32 %v1740_v2, %v1739_v17 }
 0x1cf   : > { %v1546_v4 = vadd.f32 %v1545_v54, %v1544_v6  ;;  %v1743_v10 = vadd.f32 %v1742_v8, %v1741_v42 }
 0x1d1   : > { %v1548_v14 = vadd.f32 %v1547_v7, %v1546_v4  ;;  %v1745_v19 = vadd.f32 %v1744_v55, %v1743_v10 }
 0x1d3   : > { %v1550_v41 = vadd.f32 %v1549_v26, %v1548_v14  ;;  %v1747_v13 = vadd.f32 %v1746_v12, %v1745_v19 }
 0x1d5   : > { %v1551_v60 = vrot.slane %v1550_v41, 4  ;;  %v1749_v22 = vadd.f32 %v1748_v36, %v1747_v13 }
 0x1d7   : > { %v1552_v34 = vadd.f32 %v1551_v60, %v1550_v41  ;;  %v1750_v24 = vrot.slane %v1749_v22, 4 }
 0x1d9   : > { %v1553_v33 = vrot.slane %v1552_v34, 2  ;;  %v1751_v50 = vadd.f32 %v1750_v24, %v1749_v22 }
 0x1db   : > { %v1554_v28 = vadd.f32 %v1553_v33, %v1552_v34  ;;  %v1752_v29 = vrot.slane %v1751_v50, 2 }
 0x1dd   : > { %v1555_v57 = vrot.slane %v1554_v28, 1  ;;  %v1753_v3 = vadd.f32 %v1752_v29, %v1751_v50 }
 0x1df   : > { %v1556_v5 = vadd.f32 %v1555_v57, %v1554_v28  ;;  %v1754_v27 = vrot.slane %v1753_v3, 1 }
 0x1e1   : > { %1558 = vst.msk [vmem:[%s242_s26] sm:$0x1] %vm1557_vm5, %v1556_v5  ;;  %v1755_v31 = vadd.f32 %v1754_v27, %v1753_v3 }
 0x1e2   : > { %2716 = shalt.err (!%p2713_p5)
}
 0x1e3   : > { %s2717_s24 = scalar_lea.hbm %s3818_s8, 16  ;;  %s2721_s7 = scalar_lea.hbm %s3902_s3, 64 }
 0x1e4   : > { %p2718_p6 = scmp.ne.s32.totalorder %s3818_s8, %s2717_s24  ;;  %p2722_p10 = scmp.lt.u32.totalorder %s3818_s8, %s3902_s3 }
 0x1e5   : > { %p2723_p11 = scmp.lt.u32.totalorder %s2721_s7, %s2717_s24  ;;  %p2725_p13 = scmp.lt.u32.totalorder %s2717_s24, %s3818_s8 }
 0x1e6   : > { %p2719_p7 = pnand %p2718_p6, %p2885_p4 }
 0x1e7   : > { %p2724_p12 = por %p2723_p11, %p2722_p10 }
 0x1e8   : > { %p2720_p9 = pneg %p2719_p7 }
 0x1e9   : > { %p2726_p0 = por %p2725_p13, %p2724_p12 }
 0x1eb   : > { %p2727_p1 = pnand %p2726_p0, %p2720_p9 }
 0x1ed   : > { %2730 = shalt.err (!%p2727_p1)
}
 0x1ee   : > { %2524 = dma.vmem_to_hbm [thread:$0]  (%p2885_p4), %s3820_s29, 16, %s3818_s8, %s2084_s12   ;;  %1756 = vst.msk [vmem:[%s248_s30] sm:$0x1] %vm1557_vm5, %v1755_v31 }
 0x1ef   : > { %s2088_s13 = scalar_lea.sflag [#allocation6], %s3808_s9  ;;  %s2731_s14 = scalar_lea.vmem %s3828_s5, 16 }
 0x1f0   : > { %p2732_p2 = scmp.ne.s32.totalorder %s3828_s5, %s2731_s14  ;;  %s2819_s21 = smov [#allocation5]  }
 0x1f1   : > { %s2735_s22 = sshll.u32 %s2819_s21, 4  ;;  %s2736_s22 = int_to_ptr.vmem [resolvable:$false] %s2735_s22 }
 0x1f2   : > { %p2733_p3 = pnand %p2732_p2, %p2885_p4  ;;  %s2737_s24 = scalar_lea.vmem %s2736_s22, 32 }
 0x1f3   : > { %p2738_p6 = scmp.lt.s32.totalorder %s3828_s5, %s2736_s22  ;;  %p2739_p7 = scmp.lt.s32.totalorder %s2737_s24, %s2731_s14 }
 0x1f4   : > { %p2734_p5 = pneg %p2733_p3 }
 0x1f5   : > { %p2740_p9 = por %p2739_p7, %p2738_p6 }
 0x1f7   : > { %p2741_p10 = pnand %p2740_p9, %p2734_p5 }
 0x1f9   : > { %2744 = shalt.err (!%p2741_p10)
}
 0x1fa   : > { %s2745_s9 = scalar_lea.hbm %s3826_s11, 16  ;;  %s2749_s8 = scalar_lea.hbm %s3903_s4, 64 }
 0x1fb   : > { %p2746_p11 = scmp.ne.s32.totalorder %s3826_s11, %s2745_s9  ;;  %p2750_p0 = scmp.lt.u32.totalorder %s3826_s11, %s3903_s4 }
 0x1fc   : > { %p2751_p1 = scmp.lt.u32.totalorder %s2749_s8, %s2745_s9  ;;  %p2753_p3 = scmp.lt.u32.totalorder %s2745_s9, %s3826_s11 }
 0x1fd   : > { %p2747_p12 = pnand %p2746_p11, %p2885_p4 }
 0x1fe   : > { %p2752_p2 = por %p2751_p1, %p2750_p0 }
 0x1ff   : > { %p2748_p13 = pneg %p2747_p12 }
 0x200   : > { %p2754_p5 = por %p2753_p3, %p2752_p2 }
 0x202   : > { %p2755_p6 = pnand %p2754_p5, %p2748_p13 }
 0x204   : > { %2758 = shalt.err (!%p2755_p6)
}
 0x205   : > { %2525 = dma.vmem_to_hbm [thread:$0]  (%p2885_p4), %s3828_s5, 16, %s3826_s11, %s2088_s13  }
 0x206 PF: > { %p2535_p7 = scmp.ge.s32.totalorder %s2813_s20, 2  ;;  %s2137_s6 = sand.u32 1, %s2793_s15  }
 0x207   : > { %s2138_s7 = scalar_lea.sflag [#allocation4], %s2137_s6 }
 0x208   : > { %p2529_p9 = pnand %p2535_p7, %p2892_p8 }
 0x20a   : > { %2784 = dma.done.wait (!%p2529_p9), %s2138_s7, 16  }
 0x20b   : > { %2786 = vsyncadd (!%p2529_p9), %s2138_s7, 4294967280  ;;  %s2146_s18 = scalar_lea.sflag [#allocation6], %s2137_s6 }
 0x20c   : > { %2788 = dma.done.wait (!%p2529_p9), %s2146_s18, 16  }
 0x20d   : > { %2790 = vsyncadd (!%p2529_p9), %s2146_s18, 4294967280  ;;  %s21_s20 = sadd.s32 1, %s2813_s20   ;;  %s3906_s15 = smov %s2797_s16 }
 0x20e   : > { %p18_p10 = scmp.ge.s32.totalorder %s21_s20, 6   ;;  %s3907_s16 = smov %s2801_s17 }
 0x20f   : > { %s3908_s17 = smov %s2898_s28  ;;  %s3909_s18 = smov %s2809_s19 }
 0x210   : > { %s3910_s19 = smov %s3912_s23  ;;  %20 = sbr.rel (!%p18_p10) target bundleno = 6 (0x6), region = 103 }
 0x217   :  { %2150 = vsyncpa [#allocation4], 1 }
 0x218   :  { %2152 = vsyncpa [#allocation4 + $0x1], 1 }
 0x219   :  { %2153 = vsyncpa [#allocation6], 1 }
 0x21a   :  { %2155 = vsyncpa [#allocation6 + $0x1], 1 }

</bundles_post_ra>
